<compile_context>
chip_gen: v5e
topology: v5e:2x2
jax: 0.10.0
libtpu: 0.0.40
codegen_flags: <defaults>
</compile_context>

<pallas_src>
import functools

import jax
import jax.numpy as jnp
from jax.experimental import pallas as pl
from jax.experimental.pallas import tpu as pltpu

_SUBLANE = 8


def _round_up(x, m):
    return ((x + m - 1) // m) * m


def _cdiv(a, b):
    return -(-a // b)


def _bf16_epilogue_default():
    """bf16 bias/ReLU epilogue on chips with a bf16 VPU (v6e/v7x); f32 elsewhere.
    Either path is numerically valid on every generation — this is a perf default only."""
    try:
        kind = jax.devices()[0].device_kind.lower()
    except Exception:
        return False
    return not any(tag in kind for tag in ("v5 lite", "v5lite", "v5e", "v4", "v3", "v2"))


def _choose_batch_tiling(B, batch_tile):
    """Pick (tile, padded_batch, n_tiles):
       * tile is divisible by 8 (sublane) and ~<= batch_tile,
       * padding waste is bounded (tile ~= cdiv(B, n_tiles), not a fixed 256/512),
       * the grid has >= 2 tiles once B >= 512 so the 'parallel' axis can shard
         across both v7x TensorCores."""
    n = max(1, _cdiv(B, batch_tile))
    if B >= 512 and n < 2:
        n = 2
    bt = _round_up(_cdiv(B, n), _SUBLANE)
    return bt, n * bt, n


def actor_kernel(x_ref, w1_ref, b1_ref, w2_ref, b2_ref,
                 w3_ref, b3_ref, w4_ref, b4_ref, o_ref, *, epilogue_dtype):
    ed = epilogue_dtype

    def layer(h_bf16, w_ref, b_ref):
        # MXU matmul: bf16 operands, f32 accumulation. Bias + ReLU epilogue in `ed`
        # (bf16 on v6e/v7x, f32 on v5e), then back to bf16 for the next MXU operand.
        acc = jnp.dot(h_bf16, w_ref[...], preferred_element_type=jnp.float32)
        act = jnp.maximum(acc.astype(ed) + b_ref[...].astype(ed), 0)
        return act.astype(jnp.bfloat16)

    h = layer(x_ref[...].astype(jnp.bfloat16), w1_ref, b1_ref)   # obs -> 512, ReLU
    h = layer(h, w2_ref, b2_ref)                                 # 512 -> 256, ReLU
    h = layer(h, w3_ref, b3_ref)                                 # 256 -> 128, ReLU
    # Final layer: (bt, action_dim) is tiny, keep bias + tanh in f32 for precision.
    acc = jnp.dot(h, w4_ref[...], preferred_element_type=jnp.float32)
    o_ref[...] = jnp.tanh(acc + b4_ref[...])                     # 128 -> action, Tanh


def actor_forward(x, params, *, batch_tile=512, epilogue_dtype=None):
    """x: [B, obs_dim] (f32 or bf16). params: w1..w4 bf16 [in,out], b1..b4 f32 [1,out]."""
    B, obs_dim = x.shape
    h1 = params["w1"].shape[1]
    h2 = params["w2"].shape[1]
    h3 = params["w3"].shape[1]
    action_dim = params["w4"].shape[1]

    if epilogue_dtype is None:
        epilogue_dtype = jnp.bfloat16 if _bf16_epilogue_default() else jnp.float32

    # v7x has 64 MiB VMEM (32 MiB default scoped) vs 128 MiB on v5e/v6e: keep the
    # tile small enough that activations + double-buffered x/out always fit.
    batch_tile = min(int(batch_tile), 2048)

    bt, B_pad, n_tiles = _choose_batch_tiling(B, batch_tile)
    if B_pad != B:
        x = jnp.pad(x, ((0, B_pad - B), (0, 0)))

    # Advisory cost for XLA's scheduler.
    flops = 2 * B_pad * (obs_dim * h1 + h1 * h2 + h2 * h3 + h3 * action_dim)
    param_bytes = sum(int(a.size) * a.dtype.itemsize for a in params.values())
    bytes_accessed = (int(x.size) * x.dtype.itemsize + param_bytes
                      + B_pad * action_dim * 4)
    cost = pl.CostEstimate(flops=int(flops),
                           transcendentals=int(B_pad * action_dim),
                           bytes_accessed=int(bytes_accessed))

    # Grid-invariant (full-array) specs for weights/biases: fetched once, reused
    # across all batch tiles.
    def full(a):
        return pl.BlockSpec(a.shape, lambda i: (0,) * a.ndim)

    kernel = functools.partial(actor_kernel, epilogue_dtype=epilogue_dtype)

    out = pl.pallas_call(
        kernel,
        out_shape=jax.ShapeDtypeStruct((B_pad, action_dim), jnp.float32),
        grid_spec=pltpu.PrefetchScalarGridSpec(
            num_scalar_prefetch=0,
            grid=(n_tiles,),
            in_specs=[
                pl.BlockSpec((bt, obs_dim), lambda i: (i, 0)),   # x, batch-tiled
                full(params["w1"]), full(params["b1"]),
                full(params["w2"]), full(params["b2"]),
                full(params["w3"]), full(params["b3"]),
                full(params["w4"]), full(params["b4"]),
            ],
            # Unpadded output: last dim equals the full array dim (action_dim), so the
            # block is legal and we avoid the 64x-amplified f32 writeback of lane-padding.
            out_specs=pl.BlockSpec((bt, action_dim), lambda i: (i, 0)),
        ),
        compiler_params=pltpu.CompilerParams(
            dimension_semantics=("parallel",)),   # shards batch tiles across v7x TCs
        cost_estimate=cost,
    )(x, params["w1"], params["b1"], params["w2"], params["b2"],
      params["w3"], params["b3"], params["w4"], params["b4"])

    return out[:B]


def init_params(key, obs_dim, action_dim):
    """Deterministic He-style init (mirrors init_relu_weights intent). Weights bf16 [in,out]."""
    sizes = [(obs_dim, 512), (512, 256), (256, 128), (128, action_dim)]
    params = {}
    keys = jax.random.split(key, len(sizes))
    for idx, ((fan_in, fan_out), k) in enumerate(zip(sizes, keys), start=1):
        scale = jnp.sqrt(2.0 / fan_in)
        w = jax.random.normal(k, (fan_in, fan_out), jnp.float32) * scale
        params[f"w{idx}"] = w.astype(jnp.bfloat16)
        params[f"b{idx}"] = jnp.zeros((1, fan_out), jnp.float32)
    return params


def actor_reference(x, params, *, epilogue_dtype=None):
    """Pure-JAX reference mirroring the kernel numerics (bf16 MXU operands, f32 accum,
    configurable bias/ReLU epilogue dtype)."""
    if epilogue_dtype is None:
        epilogue_dtype = jnp.bfloat16 if _bf16_epilogue_default() else jnp.float32
    ed = epilogue_dtype

    def layer(h, w, b):
        acc = jnp.dot(h.astype(jnp.bfloat16), w.astype(jnp.bfloat16),
                      preferred_element_type=jnp.float32)
        return jnp.maximum(acc.astype(ed) + b.astype(ed), 0).astype(jnp.bfloat16)

    h = layer(x, params["w1"], params["b1"])
    h = layer(h, params["w2"], params["b2"])
    h = layer(h, params["w3"], params["b3"])
    acc = jnp.dot(h, params["w4"].astype(jnp.bfloat16),
                  preferred_element_type=jnp.float32)
    return jnp.tanh(acc + params["b4"])


if __name__ == "__main__":
    OBS_DIM = 24      # Tennis env observation size
    ACTION_DIM = 2    # Tennis env action size

    key = jax.random.PRNGKey(0)
    k_params, k_x1, k_x2, k_x3 = jax.random.split(key, 4)
    params = init_params(k_params, OBS_DIM, ACTION_DIM)

    # Small aligned batch (single-tile grid).
    x = jax.random.normal(k_x1, (64, OBS_DIM), jnp.float32)
    out = jax.block_until_ready(actor_forward(x, params))
    ref = jax.block_until_ready(actor_reference(x, params))
    assert out.shape == (64, ACTION_DIM)
    assert jnp.allclose(out, ref, atol=2e-2, rtol=2e-2), float(jnp.max(jnp.abs(out - ref)))

    # Ragged batch (exercises sublane padding + slice-back).
    x2 = jax.random.normal(k_x2, (37, OBS_DIM), jnp.float32)
    out2 = jax.block_until_ready(actor_forward(x2, params))
    ref2 = jax.block_until_ready(actor_reference(x2, params))
    assert out2.shape == (37, ACTION_DIM)
    assert jnp.allclose(out2, ref2, atol=2e-2, rtol=2e-2), float(jnp.max(jnp.abs(out2 - ref2)))

    # Larger batch (exercises the multi-tile grid / megacore split and padding-waste bound).
    x3 = jax.random.normal(k_x3, (600, OBS_DIM), jnp.float32)
    out3 = jax.block_until_ready(actor_forward(x3, params))
    ref3 = jax.block_until_ready(actor_reference(x3, params))
    assert out3.shape == (600, ACTION_DIM)
    assert jnp.allclose(out3, ref3, atol=2e-2, rtol=2e-2), float(jnp.max(jnp.abs(out3 - ref3)))

    # Explicit f32-epilogue path (the v5e default) should also run and match its reference.
    out_f = jax.block_until_ready(actor_forward(x, params, epilogue_dtype=jnp.float32))
    ref_f = jax.block_until_ready(actor_reference(x, params, epilogue_dtype=jnp.float32))
    assert jnp.allclose(out_f, ref_f, atol=2e-2, rtol=2e-2), float(jnp.max(jnp.abs(out_f - ref_f)))

    print("KERNEL_OK")
</pallas_src>

<mosaic_0001>
module attributes {stable_mosaic.version = 11 : i64} {
  func.func @actor_kernel(%arg0: i32, %arg1: memref<64x24xf32, #tpu.memory_space<vmem>>, %arg2: memref<24x512xbf16, #tpu.memory_space<vmem>>, %arg3: memref<1x512xf32, #tpu.memory_space<vmem>>, %arg4: memref<512x256xbf16, #tpu.memory_space<vmem>>, %arg5: memref<1x256xf32, #tpu.memory_space<vmem>>, %arg6: memref<256x128xbf16, #tpu.memory_space<vmem>>, %arg7: memref<1x128xf32, #tpu.memory_space<vmem>>, %arg8: memref<128x2xbf16, #tpu.memory_space<vmem>>, %arg9: memref<1x2xf32, #tpu.memory_space<vmem>>, %arg10: memref<64x2xf32, #tpu.memory_space<vmem>>) attributes {dimension_semantics = [#tpu.dimension_semantics<parallel>], iteration_bounds = array<i64: 1>, scalar_prefetch = 0 : i64, scratch_operands = 0 : i64, tpu.core_type = #tpu.core_type<tc>, window_params = [{transform_indices = @transform_0, window_bounds = array<i64: 64, 24>}, {pipeline_mode = #tpu.pipeline_mode<synchronous>, transform_indices = @transform_1, window_bounds = array<i64: 24, 512>}, {pipeline_mode = #tpu.pipeline_mode<synchronous>, transform_indices = @transform_2, window_bounds = array<i64: 1, 512>}, {pipeline_mode = #tpu.pipeline_mode<synchronous>, transform_indices = @transform_3, window_bounds = array<i64: 512, 256>}, {pipeline_mode = #tpu.pipeline_mode<synchronous>, transform_indices = @transform_4, window_bounds = array<i64: 1, 256>}, {pipeline_mode = #tpu.pipeline_mode<synchronous>, transform_indices = @transform_5, window_bounds = array<i64: 256, 128>}, {pipeline_mode = #tpu.pipeline_mode<synchronous>, transform_indices = @transform_6, window_bounds = array<i64: 1, 128>}, {pipeline_mode = #tpu.pipeline_mode<synchronous>, transform_indices = @transform_7, window_bounds = array<i64: 128, 2>}, {pipeline_mode = #tpu.pipeline_mode<synchronous>, transform_indices = @transform_8, window_bounds = array<i64: 1, 2>}, {transform_indices = @transform_9, window_bounds = array<i64: 64, 2>}]} {
    %c0 = arith.constant 0 : index
    %c0_0 = arith.constant 0 : index
    %0 = vector.load %arg1[%c0, %c0_0] : memref<64x24xf32, #tpu.memory_space<vmem>>, vector<64x24xf32>
    %1 = arith.truncf %0 : vector<64x24xf32> to vector<64x24xbf16>
    %c0_1 = arith.constant 0 : index
    %c0_2 = arith.constant 0 : index
    %2 = vector.load %arg2[%c0_1, %c0_2] : memref<24x512xbf16, #tpu.memory_space<vmem>>, vector<24x512xbf16>
    %cst = arith.constant dense<0.000000e+00> : vector<64x512xf32>
    %3 = tpu.matmul %1, %2, %cst {dimension_numbers = #tpu.dot_dimension_numbers<[1], [0], [0], [1], [0, 0, 1, 1], [], []>} : vector<64x24xbf16>, vector<24x512xbf16>, vector<64x512xf32> -> vector<64x512xf32>
    %4 = arith.truncf %3 : vector<64x512xf32> to vector<64x512xbf16>
    %c0_3 = arith.constant 0 : index
    %c0_4 = arith.constant 0 : index
    %5 = vector.load %arg3[%c0_3, %c0_4] : memref<1x512xf32, #tpu.memory_space<vmem>>, vector<1x512xf32>
    %6 = arith.truncf %5 : vector<1x512xf32> to vector<1x512xbf16>
    %7 = vector.broadcast %6 : vector<1x512xbf16> to vector<64x512xbf16>
    %8 = arith.addf %4, %7 : vector<64x512xbf16>
    %cst_5 = arith.constant 0.000000e+00 : bf16
    %9 = vector.broadcast %cst_5 : bf16 to vector<64x512xbf16>
    %10 = arith.maximumf %8, %9 : vector<64x512xbf16>
    %c0_6 = arith.constant 0 : index
    %c0_7 = arith.constant 0 : index
    %11 = vector.load %arg4[%c0_6, %c0_7] : memref<512x256xbf16, #tpu.memory_space<vmem>>, vector<512x256xbf16>
    %cst_8 = arith.constant dense<0.000000e+00> : vector<64x256xf32>
    %12 = tpu.matmul %10, %11, %cst_8 {dimension_numbers = #tpu.dot_dimension_numbers<[1], [0], [0], [1], [0, 0, 1, 1], [], []>} : vector<64x512xbf16>, vector<512x256xbf16>, vector<64x256xf32> -> vector<64x256xf32>
    %13 = arith.truncf %12 : vector<64x256xf32> to vector<64x256xbf16>
    %c0_9 = arith.constant 0 : index
    %c0_10 = arith.constant 0 : index
    %14 = vector.load %arg5[%c0_9, %c0_10] : memref<1x256xf32, #tpu.memory_space<vmem>>, vector<1x256xf32>
    %15 = arith.truncf %14 : vector<1x256xf32> to vector<1x256xbf16>
    %16 = vector.broadcast %15 : vector<1x256xbf16> to vector<64x256xbf16>
    %17 = arith.addf %13, %16 : vector<64x256xbf16>
    %cst_11 = arith.constant 0.000000e+00 : bf16
    %18 = vector.broadcast %cst_11 : bf16 to vector<64x256xbf16>
    %19 = arith.maximumf %17, %18 : vector<64x256xbf16>
    %c0_12 = arith.constant 0 : index
    %c0_13 = arith.constant 0 : index
    %20 = vector.load %arg6[%c0_12, %c0_13] : memref<256x128xbf16, #tpu.memory_space<vmem>>, vector<256x128xbf16>
    %cst_14 = arith.constant dense<0.000000e+00> : vector<64x128xf32>
    %21 = tpu.matmul %19, %20, %cst_14 {dimension_numbers = #tpu.dot_dimension_numbers<[1], [0], [0], [1], [0, 0, 1, 1], [], []>} : vector<64x256xbf16>, vector<256x128xbf16>, vector<64x128xf32> -> vector<64x128xf32>
    %22 = arith.truncf %21 : vector<64x128xf32> to vector<64x128xbf16>
    %c0_15 = arith.constant 0 : index
    %c0_16 = arith.constant 0 : index
    %23 = vector.load %arg7[%c0_15, %c0_16] : memref<1x128xf32, #tpu.memory_space<vmem>>, vector<1x128xf32>
    %24 = arith.truncf %23 : vector<1x128xf32> to vector<1x128xbf16>
    %25 = vector.broadcast %24 : vector<1x128xbf16> to vector<64x128xbf16>
    %26 = arith.addf %22, %25 : vector<64x128xbf16>
    %cst_17 = arith.constant 0.000000e+00 : bf16
    %27 = vector.broadcast %cst_17 : bf16 to vector<64x128xbf16>
    %28 = arith.maximumf %26, %27 : vector<64x128xbf16>
    %c0_18 = arith.constant 0 : index
    %c0_19 = arith.constant 0 : index
    %29 = vector.load %arg8[%c0_18, %c0_19] : memref<128x2xbf16, #tpu.memory_space<vmem>>, vector<128x2xbf16>
    %cst_20 = arith.constant dense<0.000000e+00> : vector<64x2xf32>
    %30 = tpu.matmul %28, %29, %cst_20 {dimension_numbers = #tpu.dot_dimension_numbers<[1], [0], [0], [1], [0, 0, 1, 1], [], []>} : vector<64x128xbf16>, vector<128x2xbf16>, vector<64x2xf32> -> vector<64x2xf32>
    %c0_21 = arith.constant 0 : index
    %c0_22 = arith.constant 0 : index
    %31 = vector.load %arg9[%c0_21, %c0_22] : memref<1x2xf32, #tpu.memory_space<vmem>>, vector<1x2xf32>
    %32 = vector.broadcast %31 : vector<1x2xf32> to vector<64x2xf32>
    %33 = arith.addf %30, %32 : vector<64x2xf32>
    %34 = math.tanh %33 : vector<64x2xf32>
    %c0_23 = arith.constant 0 : index
    %c0_24 = arith.constant 0 : index
    %35 = vector.load %arg10[%c0_23, %c0_24] : memref<64x2xf32, #tpu.memory_space<vmem>>, vector<64x2xf32>
    tpu.vector_store %arg10[%c0_23, %c0_24], %34 {strides = array<i32>} : memref<64x2xf32, #tpu.memory_space<vmem>>, vector<64x2xf32>,
    return
  }
  func.func @transform_0(%arg0: i32) -> (i32, i32) {
    %c0_i32 = arith.constant 0 : i32
    %c0_i32_0 = arith.constant 0 : i32
    return %arg0, %c0_i32 : i32, i32
  }
  func.func @transform_1(%arg0: i32) -> (i32, i32) {
    %c0_i32 = arith.constant 0 : i32
    %c0_i32_0 = arith.constant 0 : i32
    %c0_i32_1 = arith.constant 0 : i32
    return %c0_i32, %c0_i32_0 : i32, i32
  }
  func.func @transform_2(%arg0: i32) -> (i32, i32) {
    %c0_i32 = arith.constant 0 : i32
    %c0_i32_0 = arith.constant 0 : i32
    %c0_i32_1 = arith.constant 0 : i32
    return %c0_i32, %c0_i32_0 : i32, i32
  }
  func.func @transform_3(%arg0: i32) -> (i32, i32) {
    %c0_i32 = arith.constant 0 : i32
    %c0_i32_0 = arith.constant 0 : i32
    %c0_i32_1 = arith.constant 0 : i32
    return %c0_i32, %c0_i32_0 : i32, i32
  }
  func.func @transform_4(%arg0: i32) -> (i32, i32) {
    %c0_i32 = arith.constant 0 : i32
    %c0_i32_0 = arith.constant 0 : i32
    %c0_i32_1 = arith.constant 0 : i32
    return %c0_i32, %c0_i32_0 : i32, i32
  }
  func.func @transform_5(%arg0: i32) -> (i32, i32) {
    %c0_i32 = arith.constant 0 : i32
    %c0_i32_0 = arith.constant 0 : i32
    %c0_i32_1 = arith.constant 0 : i32
    return %c0_i32, %c0_i32_0 : i32, i32
  }
  func.func @transform_6(%arg0: i32) -> (i32, i32) {
    %c0_i32 = arith.constant 0 : i32
    %c0_i32_0 = arith.constant 0 : i32
    %c0_i32_1 = arith.constant 0 : i32
    return %c0_i32, %c0_i32_0 : i32, i32
  }
  func.func @transform_7(%arg0: i32) -> (i32, i32) {
    %c0_i32 = arith.constant 0 : i32
    %c0_i32_0 = arith.constant 0 : i32
    %c0_i32_1 = arith.constant 0 : i32
    return %c0_i32, %c0_i32_0 : i32, i32
  }
  func.func @transform_8(%arg0: i32) -> (i32, i32) {
    %c0_i32 = arith.constant 0 : i32
    %c0_i32_0 = arith.constant 0 : i32
    %c0_i32_1 = arith.constant 0 : i32
    return %c0_i32, %c0_i32_0 : i32, i32
  }
  func.func @transform_9(%arg0: i32) -> (i32, i32) {
    %c0_i32 = arith.constant 0 : i32
    %c0_i32_0 = arith.constant 0 : i32
    return %arg0, %c0_i32 : i32, i32
  }
}

</mosaic_0001>

<bundles_post_ra>
// kernel: tpu_custom_call.1
= control target key start
LH: loop header
LB: loop body
LE: loop exit
PB: predicated region body
PF: predicated region fallthrough
CT: control target
= control target key end

     0   :  { %14 = vsyncpa [#allocation3], 0  ;;  %s2517_s0 = inlined_call_operand.vmem [shape: f32[64,24], index: 0, kind: input, shape index: {}]   ;;  %s2518_s1 = inlined_call_operand.hbm [shape: bf16[24,512], index: 1, kind: input, shape index: {}]   ;;  %s2519_s2 = inlined_call_operand.vmem [shape: f32[1,512], index: 2, kind: input, shape index: {}]   ;;  %s2520_s3 = inlined_call_operand.hbm [shape: bf16[512,256], index: 3, kind: input, shape index: {}]   ;;  %s2521_s4 = inlined_call_operand.vmem [shape: f32[1,256], index: 4, kind: input, shape index: {}]   ;;  %s2522_s5 = inlined_call_operand.vmem [shape: bf16[256,128], index: 5, kind: input, shape index: {}]   ;;  %s2523_s6 = inlined_call_operand.vmem [shape: f32[1,128], index: 6, kind: input, shape index: {}]   ;;  %s2524_s7 = inlined_call_operand.vmem [shape: bf16[128,2], index: 7, kind: input, shape index: {}]   ;;  %s2525_s8 = inlined_call_operand.vmem [shape: f32[1,2], index: 8, kind: input, shape index: {}]   ;;  %s2526_s9 = inlined_call_operand.vmem [shape: f32[64,2], index: 9, kind: output, shape index: {}]  }
   0x1   :  { %s22_s11 = sshll.u32 %s2518_s1, 4  ;;  %s23_s11 = int_to_ptr.hbm [resolvable:$true] %s22_s11 }
   0x2   :  { %15 = vsyncpa [#allocation5], 0  ;;  %s2127_s12 = smov [#allocation2]   ;;  %s37_s16 = sshll.u32 %s2520_s3, 4  ;;  %s38_s16 = int_to_ptr.hbm [resolvable:$true] %s37_s16 }
   0x3   :  { %s24_s13 = sshll.u32 %s2127_s12, 4  ;;  %s2128_s17 = smov 256   ;;  %s25_s13 = int_to_ptr.vmem [resolvable:$true] %s24_s13 }
   0x4   :  { %s2129_s18 = smov 16   ;;  %s2130_s19 = smov [#allocation4]  }
   0x5   :  { %30 = dma.hbm_to_vmem [thread:$0]  %s23_s11, 768, %s25_s13, [#allocation3], %s2128_s17, %s2128_s17, %s2129_s18  }
   0x6   :  { %s39_s20 = sshll.u32 %s2130_s19, 4  ;;  %s2131_s21 = smov 128   ;;  %s40_s20 = int_to_ptr.vmem [resolvable:$true] %s39_s20 }
   0x7   :  { %s2132_s22 = smov 8  }
   0x8   :  { %45 = dma.hbm_to_vmem [thread:$0]  %s38_s16, 8192, %s40_s20, [#allocation5], %s2131_s21, %s2131_s21, %s2132_s22  }
   0x9   :  { %2123 = dma.done.wait [#allocation3], 768  }
   0xa   :  { %2124 = vsyncadd [#allocation3], 4294966528 }
   0xb   :  { %2125 = dma.done.wait [#allocation5], 8192  }
   0xc   :  { %2126 = vsyncadd [#allocation5], 4294959104  ;;  %v81_v0 = vld [vmem:[#allocation2 + $0x20] sm:$0xff]  ;;  %vm126_vm0 = vcmask 1043456   ;;  %v1950_v6 = vld [vmem:[#allocation2 + $0xc] sm:$0xf0] }
   0xd   :  { %v97_v1 = vunpack.c.l.b16 %v81_v0  ;;  %v98_v2 = vunpack.c.h.b16 %v81_v0  ;;  %v1566_v5 = vld [vmem:[#allocation2] sm:$0xf]  ;;  %v82_v7 = vld [vmem:[#allocation2 + $0x28] sm:$0xff]  ;;  %v1948_v8 = vld [vmem:[#allocation2 + $0x4] sm:$0xf]  ;;  %vm113_vm1 = vcmask 195584  }
   0xe   :  { %v1568_v9 = vld [vmem:[#allocation2 + $0x10] sm:$0xf0]  ;;  %v99_v10 = vunpack.c.l.b16 %v82_v7  ;;  %v65_v13 = vld [vmem:[%s2517_s0] sm:$0xff]  ;;  %v1567_v14 = vor.u32 %v1950_v6, %v1566_v5  ;;  %v66_v15 = vld [vmem:[%s2517_s0 + $0x8] sm:$0xff]  ;;  %v100_v25 = vunpack.c.h.b16 %v82_v7  ;;  %vm1549_vm2 = vcmask 15360  }
   0xf   :  { %v105_v3 = vpack.c.b16 %v97_v1, %v97_v1  ;;  %v106_v4 = vpack.c.b16 %v98_v2, %v98_v2  ;;  %v69_v16 = vld [vmem:[%s2517_s0 + $0x20] sm:$0xff]  ;;  %v70_v17 = vld [vmem:[%s2517_s0 + $0x28] sm:$0xff]  ;;  %v1571_v19 = vor.u32 %v1948_v8, %v1568_v9  ;;  %v1951_v22 = vld [vmem:[#allocation2 + $0x14] sm:$0xf0]  ;;  %v73_v23 = vpack.c.bf16 %v66_v15, %v65_v13 }
  0x10   :  { %v107_v18 = vpack.c.b16 %v99_v10, %v99_v10  ;;  %v1574_v21 = vld [vmem:[#allocation2 + $0x8] sm:$0xf]  ;;  %v75_v24 = vpack.c.bf16 %v70_v17, %v69_v16  ;;  %v108_v27 = vpack.c.b16 %v100_v25, %v100_v25  ;;  %v1949_v28 = vld [vmem:[#allocation2 + $0xc] sm:$0xf]  ;;  %v1576_v29 = vld [vmem:[#allocation2 + $0x18] sm:$0xf0] }
  0x11   :  { %v128_v11 = vsel %vm126_vm0, %v105_v3, 0  ;;  %v131_v12 = vsel %vm126_vm0, %v106_v4, 0  ;;  %v1575_v26 = vor.u32 %v1951_v22, %v1574_v21  ;;  %v1579_v31 = vor.u32 %v1949_v28, %v1576_v29  ;;  %v67_v32 = vld [vmem:[%s2517_s0 + $0x10] sm:$0xff]  ;;  %v68_v33 = vld [vmem:[%s2517_s0 + $0x18] sm:$0xff]  ;;  %v1654_v38 = vld [vmem:[#allocation4 + $0x70] sm:$0xf] }
  0x12   :  { %145 = vmatpush.bf16.msra.mxu0 %v128_v11  ;;  %2040 = vmatpush.bf16.msra.mxu3 %v128_v11  ;;  %v134_v20 = vsel %vm126_vm0, %v107_v18, 0  ;;  %v137_v30 = vsel %vm126_vm0, %v108_v27, 0  ;;  %v71_v34 = vld [vmem:[%s2517_s0 + $0x30] sm:$0xff]  ;;  %v72_v35 = vld [vmem:[%s2517_s0 + $0x38] sm:$0xff]  ;;  %v74_v36 = vpack.c.bf16 %v68_v33, %v67_v32  ;;  %v1967_v39 = vld [vmem:[#allocation4 + $0x74] sm:$0xf0] }
  0x13   :  { %174 = vmatpush.bf16.msra.mxu1 %v131_v12  ;;  %203 = vmatpush.bf16.msra.mxu2 %v134_v20  ;;  %v76_v37 = vpack.c.bf16 %v72_v35, %v71_v34  ;;  %v1718_v40 = vld [vmem:[#allocation4 + $0xf0] sm:$0xf]  ;;  %v1655_v41 = vor.u32 %v1967_v39, %v1654_v38  ;;  %v1983_v42 = vld [vmem:[#allocation4 + $0xf4] sm:$0xf0]  ;;  %v1646_v43 = vld [vmem:[#allocation4 + $0x60] sm:$0xf] }
  0x14   :  { %v1965_v44 = vld [vmem:[#allocation4 + $0x64] sm:$0xf0]  ;;  %v1719_v45 = vor.u32 %v1983_v42, %v1718_v40  ;;  %v1710_v46 = vld [vmem:[#allocation4 + $0xe0] sm:$0xf]  ;;  %v1638_v50 = vld [vmem:[#allocation4 + $0x50] sm:$0xf] }
  0x15   :  { %v1981_v47 = vld [vmem:[#allocation4 + $0xe4] sm:$0xf0]  ;;  %v1647_v48 = vor.u32 %v1965_v44, %v1646_v43  ;;  %v1963_v51 = vld [vmem:[#allocation4 + $0x54] sm:$0xf0]  ;;  %v1702_v52 = vld [vmem:[#allocation4 + $0xd0] sm:$0xf] }
  0x16   :  { %146 = vmatpush.bf16.msra.mxu0 %v1567_v14  ;;  %2041 = vmatpush.bf16.msra.mxu3 %v1567_v14  ;;  %v1711_v49 = vor.u32 %v1981_v47, %v1710_v46  ;;  %v1979_v53 = vld [vmem:[#allocation4 + $0xd4] sm:$0xf0]  ;;  %v1639_v54 = vor.u32 %v1963_v51, %v1638_v50  ;;  %v1630_v56 = vld [vmem:[#allocation4 + $0x40] sm:$0xf]  ;;  %v1961_v57 = vld [vmem:[#allocation4 + $0x44] sm:$0xf0] }
  0x17   :  { %175 = vmatpush.bf16.msra.mxu1 %v1571_v19  ;;  %204 = vmatpush.bf16.msra.mxu2 %v1575_v26  ;;  %v1703_v55 = vor.u32 %v1979_v53, %v1702_v52  ;;  %v1694_v58 = vld [vmem:[#allocation4 + $0xc0] sm:$0xf]  ;;  %v1631_v59 = vor.u32 %v1961_v57, %v1630_v56  ;;  %v1977_v60 = vld [vmem:[#allocation4 + $0xc4] sm:$0xf0]  ;;  %v1622_v62 = vld [vmem:[#allocation4 + $0x30] sm:$0xf] }
  0x18   :  { %v1695_v61 = vor.u32 %v1977_v60, %v1694_v58  ;;  %v1959_v63 = vld [vmem:[#allocation4 + $0x34] sm:$0xf0]  ;;  %v1686_v0 = vld [vmem:[#allocation4 + $0xb0] sm:$0xf]  ;;  %v1614_v4 = vld [vmem:[#allocation4 + $0x20] sm:$0xf] }
  0x19   :  { %1580 = vmatmul.msk.bf16.vlgmr.msra.gmra.mxu0 %vm113_vm1, %v73_v23  ;;  %1582 = vmatmul.msk.bf16.vlgmr.msra.gmra.mxu3 %vm113_vm1, %v75_v24  ;;  %v1623_v1 = vor.u32 %v1959_v63, %v1622_v62  ;;  %v1975_v2 = vld [vmem:[#allocation4 + $0xb4] sm:$0xf0]  ;;  %v1957_v5 = vld [vmem:[#allocation4 + $0x24] sm:$0xf0]  ;;  %v1678_v6 = vld [vmem:[#allocation4 + $0xa0] sm:$0xf] }
  0x1a   :  { %2042 = vmatpush.bf16.msrb.mxu3 %v134_v20  ;;  %1584 = vmatmul.msk.bf16.vlgmr.msra.gmra.mxu1 %vm113_vm1, %v73_v23  ;;  %v1687_v3 = vor.u32 %v1975_v2, %v1686_v0  ;;  %v1615_v7 = vor.u32 %v1957_v5, %v1614_v4  ;;  %v1973_v8 = vld [vmem:[#allocation4 + $0xa4] sm:$0xf0]  ;;  %v2236_v10 = vld [vmem:[%s2519_s2] sm:$0xf]  ;;  %v1955_v12 = vld [vmem:[#allocation4 + $0x14] sm:$0xf0] }
  0x1b   :  { %1588 = vmatmul.msk.bf16.vlgmr.msra.gmra.mxu2 %vm113_vm1, %v73_v23  ;;  %857 = vmatpush.bf16.msrb.mxu0 %v1655_v41  ;;  %v1679_v9 = vor.u32 %v1973_v8, %v1678_v6  ;;  %v1606_v11 = vld [vmem:[#allocation4 + $0x10] sm:$0xf]  ;;  %v1971_v15 = vld [vmem:[#allocation4 + $0x94] sm:$0xf0]  ;;  %v273_v17 = vperm.slane %v2236_v10, 0  ;;  %v274_v18 = vperm.slane %v2236_v10, 1 }
  0x1c   :  { %886 = vmatpush.bf16.msrb.mxu1 %v1719_v45  ;;  %v1607_v13 = vor.u32 %v1955_v12, %v1606_v11  ;;  %v1670_v14 = vld [vmem:[#allocation4 + $0x90] sm:$0xf]  ;;  %v2015_v20 = vld [vmem:[#allocation4 + $0x1f4] sm:$0xf0]  ;;  %v1598_v21 = vld [vmem:[#allocation4] sm:$0xf] }
  0x1d   :  { %v1671_v16 = vor.u32 %v1971_v15, %v1670_v14  ;;  %v1846_v19 = vld [vmem:[#allocation4 + $0x1f0] sm:$0xf]  ;;  %v1969_v25 = vld [vmem:[#allocation4 + $0x84] sm:$0xf0]  ;;  %v281_v28 = vpack.c.bf16 %v274_v18, %v273_v17  ;;  %v1838_v29 = vld [vmem:[#allocation4 + $0x1e0] sm:$0xf] }
  0x1e   :  { %2043 = vmatpush.bf16.msrb.mxu3 %v1575_v26  ;;  %v1847_v22 = vor.u32 %v2015_v20, %v1846_v19  ;;  %v1830_v38 = vld [vmem:[#allocation4 + $0x1d0] sm:$0xf]  ;;  %v2011_v41 = vld [vmem:[#allocation4 + $0x1d4] sm:$0xf0]  ;;  %v1774_v44 = vld [vmem:[#allocation4 + $0x160] sm:$0xf] }
  0x1f   :  { %858 = vmatpush.bf16.msrb.mxu0 %v1647_v48  ;;  %v286_v33 = vunpack.c.h.b16 %v281_v28  ;;  %v1831_v43 = vor.u32 %v2011_v41, %v1830_v38  ;;  %v1997_v45 = vld [vmem:[#allocation4 + $0x164] sm:$0xf0]  ;;  %v1822_v52 = vld [vmem:[#allocation4 + $0x1c0] sm:$0xf]  ;;  %v1995_v58 = vld [vmem:[#allocation4 + $0x154] sm:$0xf0] }
  0x20   :  { %887 = vmatpush.bf16.msrb.mxu1 %v1711_v49  ;;  %v1775_v46 = vor.u32 %v1997_v45, %v1774_v44  ;;  %v2009_v53 = vld [vmem:[#allocation4 + $0x1c4] sm:$0xf0]  ;;  %v1758_v6 = vld [vmem:[#allocation4 + $0x140] sm:$0xf]  ;;  %v1814_v8 = vld [vmem:[#allocation4 + $0x1b0] sm:$0xf] }
  0x21   :  { %v290_v35 = vpack.c.b16 %v286_v33, %v286_v33  ;;  %v1823_v57 = vor.u32 %v2009_v53, %v1822_v52  ;;  %v2007_v12 = vld [vmem:[#allocation4 + $0x1b4] sm:$0xf0]  ;;  %v1648_v41 = vld [vmem:[#allocation4 + $0x68] sm:$0xf0]  ;;  %v1640_v52 = vld [vmem:[#allocation4 + $0x58] sm:$0xf0] }
  0x22   :  { %232 = vmatpush.bf16.msra.mxu3 %v137_v30  ;;  %v2013_v30 = vld [vmem:[#allocation4 + $0x1e4] sm:$0xf0]  ;;  %v1815_v17 = vor.u32 %v2007_v12, %v1814_v8  ;;  %v1991_v33 = vld [vmem:[#allocation4 + $0x134] sm:$0xf0]  ;;  %v1712_v45 = vld [vmem:[#allocation4 + $0xe8] sm:$0xf0] }
  0x23   :  { %859 = vmatpush.bf16.msrb.mxu0 %v1639_v54  ;;  %v1839_v32 = vor.u32 %v2013_v30, %v1838_v29  ;;  %v298_v42 = vpack.i.b16 %v290_v35, %v290_v35  ;;  %v1766_v54 = vld [vmem:[#allocation4 + $0x150] sm:$0xf]  ;;  %v1720_v29 = vld [vmem:[#allocation4 + $0xf8] sm:$0xf0]  ;;  %v1978_v53 = vld [vmem:[#allocation4 + $0xd4] sm:$0xf] }
  0x24   :  { %888 = vmatpush.bf16.msrb.mxu1 %v1703_v55  ;;  %v1767_v62 = vor.u32 %v1995_v58, %v1766_v54  ;;  %v1960_v12 = vld [vmem:[#allocation4 + $0x44] sm:$0xf] }
  0x25   :  { %v300_v51 = vperm.slane %v298_v42, 0  ;;  %v1980_v42 = vld [vmem:[#allocation4 + $0xe4] sm:$0xf] }
  0x26   :  { %233 = vmatpush.bf16.msra.mxu3 %v1579_v31  ;;  %v285_v31 = vunpack.c.l.b16 %v281_v28 }
  0x27   :  { %860 = vmatpush.bf16.msrb.mxu0 %v1631_v59  ;;  %v2242_v60 = vunpack.c.l.bf16 %v300_v51  ;;  %v1962_v51 = vld [vmem:[#allocation4 + $0x54] sm:$0xf] }
  0x28   :  { %889 = vmatpush.bf16.msrb.mxu1 %v1695_v61  ;;  %v289_v34 = vpack.c.b16 %v285_v31, %v285_v31 }
  0x29   :  { %1581 = vmatmul.msk.bf16.gmra.mxu0 %vm113_vm1, %v74_v36  ;;  %1583 = vmatmul.msk.bf16.gmra.mxu3 %vm113_vm1, %v76_v37 }
  0x2a   :  { %1585 = vmatmul.msk.bf16.gmra.mxu1 %vm113_vm1, %v74_v36  ;;  %v294_v39 = vpack.i.b16 %v289_v34, %v289_v34  ;;  %v1806_v34 = vld [vmem:[#allocation4 + $0x1a0] sm:$0xf] }
  0x2b   :  { %1589 = vmatmul.msk.bf16.gmra.mxu2 %vm113_vm1, %v74_v36  ;;  %861 = vmatpush.bf16.msrb.mxu0 %v1623_v1 }
  0x2c   :  { %890 = vmatpush.bf16.msrb.mxu1 %v1687_v3  ;;  %v296_v49 = vperm.slane %v294_v39, 0 }
  0x2e   :  { %v2240_v56 = vunpack.c.l.bf16 %v296_v49 }
  0x2f   :  { %862 = vmatpush.bf16.msrb.mxu0 %v1615_v7  ;;  %v1993_v7 = vld [vmem:[#allocation4 + $0x144] sm:$0xf0] }
  0x30   :  { %891 = vmatpush.bf16.msrb.mxu1 %v1679_v9  ;;  %v1759_v11 = vor.u32 %v1993_v7, %v1758_v6 }
  0x33   :  { %863 = vmatpush.bf16.msrb.mxu0 %v1607_v13 }
  0x34   :  { %892 = vmatpush.bf16.msrb.mxu1 %v1671_v16 }
  0x39   :  { %1591 = vmatmul.msk.bf16.vlgmr.msrb.gmra.mxu3 %vm113_vm1, %v76_v37 }
  0x3a   :  { %1586 = vmatmul.msk.bf16.gmra.mxu1 %vm113_vm1, %v75_v24  ;;  %944 = vmatpush.bf16.msrb.mxu3 %v1847_v22 }
  0x3b   :  { %1590 = vmatmul.msk.bf16.gmra.mxu2 %vm113_vm1, %v75_v24 }
  0x3e   :  { %945 = vmatpush.bf16.msrb.mxu3 %v1839_v32  ;;  %v1750_v32 = vld [vmem:[#allocation4 + $0x130] sm:$0xf] }
  0x42   :  { %946 = vmatpush.bf16.msrb.mxu3 %v1831_v43 }
  0x46   :  { %947 = vmatpush.bf16.msrb.mxu3 %v1823_v57  ;;  %v1704_v57 = vld [vmem:[#allocation4 + $0xd8] sm:$0xf0] }
  0x49   :  { %1592 = vmatmul.msk.bf16.vlgmr.msra.gmra.mxu3 %vm113_vm1, %v73_v23  ;;  %v1953_v23 = vld [vmem:[#allocation4 + $0x4] sm:$0xf0] }
  0x4a   :  { %1587 = vmatmul.msk.bf16.gmra.mxu1 %vm113_vm1, %v76_v37  ;;  %v1599_v26 = vor.u32 %v1953_v23, %v1598_v21  ;;  %948 = vmatpush.bf16.msrb.mxu3 %v1815_v17  ;;  %v1976_v17 = vld [vmem:[#allocation4 + $0xc4] sm:$0xf] }
  0x4c   :  { %864 = vmatpush.bf16.msrb.mxu0 %v1599_v26  ;;  %v1656_v26 = vld [vmem:[#allocation4 + $0x78] sm:$0xf0] }
  0x59   :  { %1593 = vmatmul.msk.bf16.gmra.mxu3 %vm113_vm1, %v74_v36  ;;  %v1782_v36 = vld [vmem:[#allocation4 + $0x170] sm:$0xf] }
  0x69   :  { %1594 = vmatmul.msk.bf16.gmra.mxu3 %vm113_vm1, %v75_v24  ;;  %v1662_v24 = vld [vmem:[#allocation4 + $0x80] sm:$0xf] }
  0x6a   :  { %v1663_v27 = vor.u32 %v1969_v25, %v1662_v24  ;;  %v1966_v25 = vld [vmem:[#allocation4 + $0x74] sm:$0xf] }
  0x6b   :  { %v1659_v28 = vor.u32 %v1966_v25, %v1656_v26  ;;  %v275_v25 = vperm.slane %v2236_v10, 2  ;;  %v276_v26 = vperm.slane %v2236_v10, 3  ;;  %v1985_v10 = vld [vmem:[#allocation4 + $0x104] sm:$0xf0] }
  0x6c   :  { %893 = vmatpush.bf16.msrb.mxu1 %v1663_v27  ;;  %v1982_v27 = vld [vmem:[#allocation4 + $0xf4] sm:$0xf] }
  0x6d   :  { %v1723_v35 = vor.u32 %v1982_v27, %v1720_v29  ;;  %973 = vmatpush.bf16.msra.mxu0 %v1659_v28  ;;  %v1958_v29 = vld [vmem:[#allocation4 + $0x34] sm:$0xf] }
  0x70   :  { %1002 = vmatpush.bf16.msra.mxu1 %v1723_v35  ;;  %v1726_v35 = vld [vmem:[#allocation4 + $0x100] sm:$0xf] }
  0x79   :  { %1595 = vmatmul.msk.bf16.gmra.mxu3 %vm113_vm1, %v76_v37  ;;  %v1999_v37 = vld [vmem:[#allocation4 + $0x174] sm:$0xf0] }
  0x7a   :  { %v1783_v40 = vor.u32 %v1999_v37, %v1782_v36  ;;  %v1751_v36 = vor.u32 %v1991_v33, %v1750_v32  ;;  %v2005_v37 = vld [vmem:[#allocation4 + $0x1a4] sm:$0xf0] }
  0x7b   :  { %v1807_v39 = vor.u32 %v2005_v37, %v1806_v34  ;;  %v1688_v34 = vld [vmem:[#allocation4 + $0xb8] sm:$0xf0] }
  0x7c   :  { %915 = vmatpush.bf16.msrb.mxu2 %v1783_v40  ;;  %v1964_v40 = vld [vmem:[#allocation4 + $0x64] sm:$0xf] }
  0x7d   :  { %v1651_v44 = vor.u32 %v1964_v40, %v1648_v41  ;;  %949 = vmatpush.bf16.msrb.mxu3 %v1807_v39  ;;  %v1727_v39 = vor.u32 %v1985_v10, %v1726_v35  ;;  %v2001_v40 = vld [vmem:[#allocation4 + $0x184] sm:$0xf0] }
  0x7f   :  { %974 = vmatpush.bf16.msra.mxu0 %v1651_v44  ;;  %v1616_v44 = vld [vmem:[#allocation4 + $0x28] sm:$0xf0] }
  0x80   :  { %916 = vmatpush.bf16.msrb.mxu2 %v1775_v46 }
  0x84   :  { %917 = vmatpush.bf16.msrb.mxu2 %v1767_v62 }
  0x88   :  { %918 = vmatpush.bf16.msrb.mxu2 %v1759_v11  ;;  %v1987_v11 = vld [vmem:[#allocation4 + $0x114] sm:$0xf0] }
  0x8c   :  { %919 = vmatpush.bf16.msrb.mxu2 %v1751_v36  ;;  %v1790_v36 = vld [vmem:[#allocation4 + $0x180] sm:$0xf] }
  0x96   :  { %v148_v47 = vpop.f32.mrf.mxu0 }
  0x97   :  { %v177_v48 = vpop.f32.mrf.mxu1 }
  0x98   :  { %v255_v50 = vpack.c.bf16 %v177_v48, %v148_v47  ;;  %v1715_v48 = vor.u32 %v1980_v42, %v1712_v45  ;;  %v282_v42 = vpack.c.bf16 %v276_v26, %v275_v25  ;;  %v1972_v45 = vld [vmem:[#allocation4 + $0xa4] sm:$0xf]  ;;  %v1664_v25 = vld [vmem:[#allocation4 + $0x88] sm:$0xf0] }
  0x9a   :  { %v309_v55 = vunpack.c.l.bf16 %v255_v50  ;;  %v310_v59 = vunpack.c.h.bf16 %v255_v50  ;;  %1003 = vmatpush.bf16.msra.mxu1 %v1715_v48  ;;  %v1680_v48 = vld [vmem:[#allocation4 + $0xa8] sm:$0xf0] }
  0x9c   :  { %v2244_v61 = vpop.f32.mrf.mxu3  ;;  %v345_v0 = vadd.f32 %v2240_v56, %v309_v55  ;;  %v346_v2 = vadd.f32 %v2242_v60, %v310_v59  ;;  %v1643_v55 = vor.u32 %v1962_v51, %v1640_v52  ;;  %v1998_v52 = vld [vmem:[#allocation4 + $0x174] sm:$0xf] }
  0x9e   :  { %v150_v63 = vpop.f32.mrf.mxu0  ;;  %v425_v9 = vmax.f32 %v345_v0, 0.0  ;;  %v426_v13 = vmax.f32 %v346_v2, 0.0  ;;  %v1989_v0 = vld [vmem:[#allocation4 + $0x124] sm:$0xf0]  ;;  %975 = vmatpush.bf16.msra.mxu0 %v1643_v55 }
  0x9f   :  { %v179_v1 = vpop.f32.mrf.mxu1 }
  0xa0   :  { %v257_v3 = vpack.c.bf16 %v179_v1, %v150_v63  ;;  %v1742_v63 = vld [vmem:[#allocation4 + $0x120] sm:$0xf]  ;;  %v1707_v1 = vor.u32 %v1978_v53, %v1704_v57  ;;  %v1784_v53 = vld [vmem:[#allocation4 + $0x178] sm:$0xf0]  ;;  %v287_v57 = vunpack.c.l.b16 %v282_v42 }
  0xa1   :  { %v1743_v2 = vor.u32 %v1989_v0, %v1742_v63  ;;  %v1608_v63 = vld [vmem:[#allocation4 + $0x18] sm:$0xf0] }
  0xa2   :  { %v313_v4 = vunpack.c.l.bf16 %v257_v3  ;;  %v314_v5 = vunpack.c.h.bf16 %v257_v3  ;;  %v1798_v3 = vld [vmem:[#allocation4 + $0x190] sm:$0xf]  ;;  %1004 = vmatpush.bf16.msra.mxu1 %v1707_v1  ;;  %v288_v1 = vunpack.c.h.b16 %v282_v42  ;;  %v2012_v42 = vld [vmem:[#allocation4 + $0x1e4] sm:$0xf] }
  0xa3   :  { %920 = vmatpush.bf16.msrb.mxu2 %v1743_v2 }
  0xa4   :  { %v349_v14 = vadd.f32 %v2240_v56, %v313_v4  ;;  %v350_v15 = vadd.f32 %v2242_v60, %v314_v5  ;;  %v2250_v16 = vpop.f32.mrf.mxu3  ;;  %v2003_v4 = vld [vmem:[#allocation4 + $0x194] sm:$0xf0]  ;;  %v1734_v5 = vld [vmem:[#allocation4 + $0x110] sm:$0xf] }
  0xa6   :  { %v153_v18 = vpop.f32.mrf.mxu0  ;;  %v429_v19 = vmax.f32 %v349_v14, 0.0  ;;  %v430_v20 = vmax.f32 %v350_v15, 0.0  ;;  %v1735_v14 = vor.u32 %v1987_v11, %v1734_v5  ;;  %v1672_v5 = vld [vmem:[#allocation4 + $0x98] sm:$0xf0] }
  0xa7   :  { %v182_v21 = vpop.f32.mrf.mxu1 }
  0xa8   :  { %v259_v22 = vpack.c.bf16 %v182_v21, %v153_v18  ;;  %v2252_v23 = vpack.c.bf16 %v429_v19, %v425_v9  ;;  %v2254_v24 = vpack.c.bf16 %v430_v20, %v426_v13  ;;  %v1799_v9 = vor.u32 %v2003_v4, %v1798_v3  ;;  %v1632_v13 = vld [vmem:[#allocation4 + $0x48] sm:$0xf0]  ;;  %921 = vmatpush.bf16.msrb.mxu2 %v1735_v14  ;;  %v1970_v4 = vld [vmem:[#allocation4 + $0x94] sm:$0xf] }
  0xa9   :  { %v1635_v15 = vor.u32 %v1960_v12, %v1632_v13  ;;  %v1696_v18 = vld [vmem:[#allocation4 + $0xc8] sm:$0xf0] }
  0xaa   :  { %v317_v30 = vunpack.c.l.bf16 %v259_v22  ;;  %v318_v31 = vunpack.c.h.bf16 %v259_v22  ;;  %865 = vmatmul.bf16.vlgmr.msrb.gmra.mxu0 %v2252_v23  ;;  %894 = vmatmul.bf16.vlgmr.msrb.gmra.mxu1 %v2254_v24  ;;  %v1699_v21 = vor.u32 %v1976_v17, %v1696_v18  ;;  %v1600_v17 = vld [vmem:[#allocation4 + $0x8] sm:$0xf0]  ;;  %v1968_v18 = vld [vmem:[#allocation4 + $0x84] sm:$0xf] }
  0xab   :  { %950 = vmatpush.bf16.msrb.mxu3 %v1799_v9  ;;  %976 = vmatpush.bf16.msra.mxu0 %v1635_v15  ;;  %v206_v9 = vpop.f32.mrf.mxu2  ;;  %v1952_v15 = vld [vmem:[#allocation4 + $0x4] sm:$0xf] }
  0xac   :  { %v2258_v38 = vpop.f32.mrf.mxu3  ;;  %v353_v43 = vadd.f32 %v2240_v56, %v317_v30  ;;  %v354_v47 = vadd.f32 %v2242_v60, %v318_v31  ;;  %1005 = vmatpush.bf16.msra.mxu1 %v1699_v21  ;;  %v1624_v30 = vld [vmem:[#allocation4 + $0x38] sm:$0xf0]  ;;  %v1974_v31 = vld [vmem:[#allocation4 + $0xb4] sm:$0xf]  ;;  %922 = vmatpush.bf16.msrb.mxu2 %v1727_v39  ;;  %v292_v21 = vpack.c.b16 %v288_v1, %v288_v1 }
  0xad   :  { %v1627_v33 = vor.u32 %v1958_v29, %v1624_v30  ;;  %v1691_v37 = vor.u32 %v1974_v31, %v1688_v34  ;;  %v1667_v31 = vor.u32 %v1968_v18, %v1664_v25  ;;  %v1776_v34 = vld [vmem:[#allocation4 + $0x168] sm:$0xf0] }
  0xae   :  { %v155_v46 = vpop.f32.mrf.mxu0  ;;  %v433_v54 = vmax.f32 %v353_v43, 0.0  ;;  %v434_v62 = vmax.f32 %v354_v47, 0.0  ;;  %v1791_v43 = vor.u32 %v2001_v40, %v1790_v36  ;;  %v306_v40 = vpack.i.b16 %v292_v21, %v292_v21  ;;  %v1760_v21 = vld [vmem:[#allocation4 + $0x148] sm:$0xf0] }
  0xaf   :  { %v184_v49 = vpop.f32.mrf.mxu1  ;;  %977 = vmatpush.bf16.msra.mxu0 %v1627_v33  ;;  %v1996_v33 = vld [vmem:[#allocation4 + $0x164] sm:$0xf] }
  0xb0   :  { %v261_v50 = vpack.c.bf16 %v184_v49, %v155_v46  ;;  %1006 = vmatpush.bf16.msra.mxu1 %v1691_v37  ;;  %951 = vmatpush.bf16.msrb.mxu3 %v1791_v43  ;;  %v1779_v36 = vor.u32 %v1996_v33, %v1776_v34  ;;  %v1840_v43 = vld [vmem:[#allocation4 + $0x1e8] sm:$0xf0] }
  0xb2   :  { %v321_v58 = vunpack.c.l.bf16 %v261_v50  ;;  %v322_v59 = vunpack.c.h.bf16 %v261_v50  ;;  %v1683_v50 = vor.u32 %v1972_v45, %v1680_v48 }
  0xb4   :  { %v2262_v6 = vpop.f32.mrf.mxu3  ;;  %v357_v7 = vadd.f32 %v2240_v56, %v321_v58  ;;  %v358_v8 = vadd.f32 %v2242_v60, %v322_v59  ;;  %1007 = vmatpush.bf16.msra.mxu1 %v1683_v50  ;;  %v1787_v58 = vor.u32 %v1998_v52, %v1784_v53  ;;  %v1848_v59 = vld [vmem:[#allocation4 + $0x1f8] sm:$0xf0]  ;;  %v308_v50 = vperm.slane %v306_v40, 0  ;;  %v2010_v53 = vld [vmem:[#allocation4 + $0x1d4] sm:$0xf] }
  0xb5   :  { %v1768_v52 = vld [vmem:[#allocation4 + $0x158] sm:$0xf0] }
  0xb6   :  { %v437_v19 = vmax.f32 %v357_v7, 0.0  ;;  %v438_v20 = vmax.f32 %v358_v8, 0.0  ;;  %1031 = vmatpush.bf16.msra.mxu2 %v1787_v58 }
  0xb7   :  { %v187_v22 = vpop.f32.mrf.mxu1 }
  0xb8   :  { %v2268_v27 = vpack.c.bf16 %v437_v19, %v433_v54  ;;  %v2270_v28 = vpack.c.bf16 %v438_v20, %v434_v62  ;;  %v263_v32 = vpack.c.bf16 %v187_v22, %v2244_v61  ;;  %v1956_v61 = vld [vmem:[#allocation4 + $0x24] sm:$0xf]  ;;  %v2014_v54 = vld [vmem:[#allocation4 + $0x1f4] sm:$0xf]  ;;  %v291_v20 = vpack.c.b16 %v287_v57, %v287_v57  ;;  %v1832_v57 = vld [vmem:[#allocation4 + $0x1d8] sm:$0xf0] }
  0xb9   :  { %v1619_v47 = vor.u32 %v1956_v61, %v1616_v44  ;;  %v1954_v62 = vld [vmem:[#allocation4 + $0x14] sm:$0xf]  ;;  %v1851_v2 = vor.u32 %v2014_v54, %v1848_v59  ;;  %v1603_v22 = vor.u32 %v1952_v15, %v1600_v17  ;;  %v1843_v61 = vor.u32 %v2012_v42, %v1840_v43  ;;  %v208_v44 = vpop.f32.mrf.mxu2 }
  0xba   :  { %870 = vmatmul.bf16.gmra.mxu0 %v2268_v27  ;;  %899 = vmatmul.bf16.gmra.mxu1 %v2270_v28  ;;  %v325_v46 = vunpack.c.l.bf16 %v263_v32  ;;  %v326_v49 = vunpack.c.h.bf16 %v263_v32  ;;  %v1611_v3 = vor.u32 %v1954_v62, %v1608_v63  ;;  %v302_v39 = vpack.i.b16 %v291_v20, %v291_v20  ;;  %v1992_v20 = vld [vmem:[#allocation4 + $0x144] sm:$0xf]  ;;  %v1990_v43 = vld [vmem:[#allocation4 + $0x134] sm:$0xf] }
  0xbb   :  { %978 = vmatpush.bf16.msra.mxu0 %v1619_v47  ;;  %1060 = vmatpush.bf16.msra.mxu3 %v1851_v2  ;;  %v1835_v62 = vor.u32 %v2010_v53, %v1832_v57  ;;  %v1988_v57 = vld [vmem:[#allocation4 + $0x124] sm:$0xf] }
  0xbc   :  { %v2275_v41 = vpop.f32.mrf.mxu3  ;;  %v361_v0 = vadd.f32 %v2240_v56, %v325_v46  ;;  %v362_v11 = vadd.f32 %v2242_v60, %v326_v49  ;;  %1032 = vmatpush.bf16.msra.mxu2 %v1779_v36  ;;  %v304_v47 = vperm.slane %v302_v39, 0 }
  0xbe   :  { %v441_v19 = vmax.f32 %v361_v0, 0.0  ;;  %v442_v29 = vmax.f32 %v362_v11, 0.0  ;;  %v2292_v58 = vunpack.c.l.bf16 %v304_v47  ;;  %v1816_v47 = vld [vmem:[#allocation4 + $0x1b8] sm:$0xf0] }
  0xbf   :  { %v189_v51 = vpop.f32.mrf.mxu1  ;;  %979 = vmatpush.bf16.msra.mxu0 %v1611_v3  ;;  %1061 = vmatpush.bf16.msra.mxu3 %v1843_v61  ;;  %v1752_v61 = vld [vmem:[#allocation4 + $0x138] sm:$0xf0] }
  0xc0   :  { %v265_v55 = vpack.c.bf16 %v189_v51, %v2250_v16  ;;  %v1675_v16 = vor.u32 %v1970_v4, %v1672_v5  ;;  %v2296_v4 = vunpack.c.l.bf16 %v308_v50 }
  0xc2   :  { %v329_v7 = vunpack.c.l.bf16 %v265_v55  ;;  %v330_v8 = vunpack.c.h.bf16 %v265_v55  ;;  %1008 = vmatpush.bf16.msra.mxu1 %v1675_v16  ;;  %v211_v16 = vpop.f32.mrf.mxu2 }
  0xc3   :  { %980 = vmatpush.bf16.msra.mxu0 %v1603_v22  ;;  %1062 = vmatpush.bf16.msra.mxu3 %v1835_v62 }
  0xc4   :  { %v2280_v12 = vpop.f32.mrf.mxu3  ;;  %v365_v13 = vadd.f32 %v2240_v56, %v329_v7  ;;  %v366_v14 = vadd.f32 %v2242_v60, %v330_v8 }
  0xc6   :  { %v445_v26 = vmax.f32 %v365_v13, 0.0  ;;  %v446_v30 = vmax.f32 %v366_v14, 0.0  ;;  %1009 = vmatpush.bf16.msra.mxu1 %v1667_v31  ;;  %v1824_v31 = vld [vmem:[#allocation4 + $0x1c8] sm:$0xf0] }
  0xc7   :  { %v192_v32 = vpop.f32.mrf.mxu1 }
  0xc8   :  { %v2284_v35 = vpack.c.bf16 %v445_v26, %v441_v19  ;;  %v2286_v10 = vpack.c.bf16 %v446_v30, %v442_v29  ;;  %v267_v37 = vpack.c.bf16 %v192_v32, %v2258_v38  ;;  %v1994_v38 = vld [vmem:[#allocation4 + $0x154] sm:$0xf]  ;;  %v2008_v30 = vld [vmem:[#allocation4 + $0x1c4] sm:$0xf] }
  0xc9   :  { %v1771_v55 = vor.u32 %v1994_v38, %v1768_v52  ;;  %v1827_v36 = vor.u32 %v2008_v30, %v1824_v31 }
  0xca   :  { %875 = vmatmul.bf16.gmra.mxu0 %v2284_v35  ;;  %904 = vmatmul.bf16.gmra.mxu1 %v2286_v10  ;;  %v333_v46 = vunpack.c.l.bf16 %v267_v37  ;;  %v334_v48 = vunpack.c.h.bf16 %v267_v37 }
  0xcb   :  { %1033 = vmatpush.bf16.msra.mxu2 %v1771_v55  ;;  %1063 = vmatpush.bf16.msra.mxu3 %v1827_v36 }
  0xcc   :  { %v235_v45 = vpop.f32.mrf.mxu3  ;;  %v369_v59 = vadd.f32 %v2240_v56, %v333_v46  ;;  %v370_v2 = vadd.f32 %v2242_v60, %v334_v48  ;;  %v1755_v46 = vor.u32 %v1990_v43, %v1752_v61  ;;  %v2000_v61 = vld [vmem:[#allocation4 + $0x184] sm:$0xf] }
  0xcd   :  { %v256_v49 = vpack.c.bf16 %v235_v45, %v206_v9  ;;  %v213_v45 = vpop.f32.mrf.mxu2 }
  0xce   :  { %v449_v9 = vmax.f32 %v369_v59, 0.0  ;;  %v450_v14 = vmax.f32 %v370_v2, 0.0  ;;  %v1744_v59 = vld [vmem:[#allocation4 + $0x128] sm:$0xf0] }
  0xcf   :  { %v194_v51 = vpop.f32.mrf.mxu1  ;;  %v311_v63 = vunpack.c.l.bf16 %v256_v49  ;;  %v312_v3 = vunpack.c.h.bf16 %v256_v49  ;;  %v1747_v62 = vor.u32 %v1988_v57, %v1744_v59 }
  0xd0   :  { %v269_v54 = vpack.c.bf16 %v194_v51, %v2262_v6 }
  0xd1   :  { %v347_v11 = vadd.f32 %v2292_v58, %v311_v63  ;;  %v348_v17 = vadd.f32 %v2296_v4, %v312_v3  ;;  %v2004_v3 = vld [vmem:[#allocation4 + $0x1a4] sm:$0xf] }
  0xd2   :  { %v337_v0 = vunpack.c.l.bf16 %v269_v54  ;;  %v338_v1 = vunpack.c.h.bf16 %v269_v54 }
  0xd3   :  { %v427_v29 = vmax.f32 %v347_v11, 0.0  ;;  %v428_v32 = vmax.f32 %v348_v17, 0.0 }
  0xd4   :  { %v237_v5 = vpop.f32.mrf.mxu3  ;;  %v373_v6 = vadd.f32 %v2240_v56, %v337_v0  ;;  %v374_v7 = vadd.f32 %v2242_v60, %v338_v1  ;;  %v1763_v56 = vor.u32 %v1992_v20, %v1760_v21  ;;  %v1728_v20 = vld [vmem:[#allocation4 + $0x108] sm:$0xf0] }
  0xd5   :  { %v258_v8 = vpack.c.bf16 %v237_v5, %v208_v44  ;;  %v2006_v44 = vld [vmem:[#allocation4 + $0x1b4] sm:$0xf]  ;;  %v216_v1 = vpop.f32.mrf.mxu2  ;;  %v1808_v5 = vld [vmem:[#allocation4 + $0x1a8] sm:$0xf0] }
  0xd6   :  { %v453_v13 = vmax.f32 %v373_v6, 0.0  ;;  %v454_v15 = vmax.f32 %v374_v7, 0.0  ;;  %1034 = vmatpush.bf16.msra.mxu2 %v1763_v56  ;;  %v1819_v48 = vor.u32 %v2006_v44, %v1816_v47  ;;  %v1792_v44 = vld [vmem:[#allocation4 + $0x188] sm:$0xf0] }
  0xd7   :  { %v315_v18 = vunpack.c.l.bf16 %v258_v8  ;;  %v316_v19 = vunpack.c.h.bf16 %v258_v8 }
  0xd8   :  { %v2302_v22 = vpack.c.bf16 %v453_v13, %v449_v9  ;;  %v2304_v25 = vpack.c.bf16 %v454_v15, %v450_v14  ;;  %1064 = vmatpush.bf16.msra.mxu3 %v1819_v48  ;;  %v1811_v9 = vor.u32 %v2004_v3, %v1808_v5  ;;  %v2002_v15 = vld [vmem:[#allocation4 + $0x194] sm:$0xf]  ;;  %v1795_v48 = vor.u32 %v2000_v61, %v1792_v44 }
  0xd9   :  { %v351_v60 = vadd.f32 %v2292_v58, %v315_v18  ;;  %v352_v26 = vadd.f32 %v2296_v4, %v316_v19  ;;  %v1800_v18 = vld [vmem:[#allocation4 + $0x198] sm:$0xf0]  ;;  %v1984_v19 = vld [vmem:[#allocation4 + $0x104] sm:$0xf] }
  0xda   :  { %880 = vmatmul.bf16.gmra.mxu0 %v2302_v22  ;;  %909 = vmatmul.bf16.gmra.mxu1 %v2304_v25  ;;  %v1803_v21 = vor.u32 %v2002_v15, %v1800_v18 }
  0xdb   :  { %v431_v33 = vmax.f32 %v351_v60, 0.0  ;;  %v432_v34 = vmax.f32 %v352_v26, 0.0  ;;  %1035 = vmatpush.bf16.msra.mxu2 %v1755_v46  ;;  %v1731_v60 = vor.u32 %v1984_v19, %v1728_v20 }
  0xdc   :  { %v240_v37 = vpop.f32.mrf.mxu3  ;;  %1065 = vmatpush.bf16.msra.mxu3 %v1811_v9 }
  0xdd   :  { %v2310_v39 = vpack.c.bf16 %v432_v34, %v428_v32  ;;  %v2312_v40 = vpack.c.bf16 %v431_v33, %v427_v29  ;;  %v260_v42 = vpack.c.bf16 %v240_v37, %v211_v16  ;;  %v218_v29 = vpop.f32.mrf.mxu2 }
  0xdf   :  { %923 = vmatmul.bf16.vlgmr.msrb.gmra.mxu2 %v2312_v40  ;;  %952 = vmatmul.bf16.vlgmr.msrb.gmra.mxu3 %v2310_v39  ;;  %v319_v49 = vunpack.c.l.bf16 %v260_v42  ;;  %v320_v50 = vunpack.c.h.bf16 %v260_v42 }
  0xe0   :  { %1036 = vmatpush.bf16.msra.mxu2 %v1747_v62  ;;  %1066 = vmatpush.bf16.msra.mxu3 %v1803_v21  ;;  %v2022_v21 = vld [vmem:[%s2522_s5 + $0x30] sm:$0xff] }
  0xe1   :  { %v355_v52 = vadd.f32 %v2292_v58, %v319_v49  ;;  %v356_v55 = vadd.f32 %v2296_v4, %v320_v50 }
  0xe3   :  { %v435_v2 = vmax.f32 %v355_v52, 0.0  ;;  %v436_v7 = vmax.f32 %v356_v55, 0.0 }
  0xe4   :  { %v242_v51 = vpop.f32.mrf.mxu3  ;;  %1067 = vmatpush.bf16.msra.mxu3 %v1795_v48 }
  0xe5   :  { %v262_v38 = vpack.c.bf16 %v242_v51, %v213_v45 }
  0xe7   :  { %v323_v53 = vunpack.c.l.bf16 %v262_v38  ;;  %v324_v54 = vunpack.c.h.bf16 %v262_v38 }
  0xe9   :  { %v359_v63 = vadd.f32 %v2292_v58, %v323_v53  ;;  %v360_v0 = vadd.f32 %v2296_v4, %v324_v54 }
  0xea   :  { %981 = vmatmul.bf16.vlgmr.msra.gmra.mxu0 %v2252_v23  ;;  %1010 = vmatmul.bf16.vlgmr.msra.gmra.mxu1 %v2254_v24  ;;  %v1986_v23 = vld [vmem:[#allocation4 + $0x114] sm:$0xf]  ;;  %v1736_v24 = vld [vmem:[#allocation4 + $0x118] sm:$0xf0] }
  0xeb   :  { %v439_v6 = vmax.f32 %v359_v63, 0.0  ;;  %v440_v8 = vmax.f32 %v360_v0, 0.0  ;;  %v1739_v17 = vor.u32 %v1986_v23, %v1736_v24 }
  0xec   :  { %v245_v11 = vpop.f32.mrf.mxu3 }
  0xed   :  { %v2322_v16 = vpack.c.bf16 %v439_v6, %v435_v2  ;;  %v2324_v13 = vpack.c.bf16 %v440_v8, %v436_v7  ;;  %v264_v14 = vpack.c.bf16 %v245_v11, %v216_v1  ;;  %1037 = vmatpush.bf16.msra.mxu2 %v1739_v17 }
  0xef   :  { %928 = vmatmul.bf16.gmra.mxu2 %v2322_v16  ;;  %957 = vmatmul.bf16.gmra.mxu3 %v2324_v13  ;;  %v327_v56 = vunpack.c.l.bf16 %v264_v14  ;;  %v328_v26 = vunpack.c.h.bf16 %v264_v14 }
  0xf1   :  { %v363_v32 = vadd.f32 %v2292_v58, %v327_v56  ;;  %1038 = vmatpush.bf16.msra.mxu2 %v1731_v60  ;;  %v364_v36 = vadd.f32 %v2296_v4, %v328_v26 }
  0xf3   :  { %v443_v43 = vmax.f32 %v363_v32, 0.0  ;;  %v444_v46 = vmax.f32 %v364_v36, 0.0 }
  0xf4   :  { %v247_v30 = vpop.f32.mrf.mxu3 }
  0xf5   :  { %v266_v31 = vpack.c.bf16 %v247_v30, %v218_v29  ;;  %v2021_v30 = vld [vmem:[%s2522_s5 + $0x28] sm:$0xff] }
  0xf7   :  { %v331_v33 = vunpack.c.l.bf16 %v266_v31  ;;  %v332_v34 = vunpack.c.h.bf16 %v266_v31 }
  0xf9   :  { %v367_v37 = vadd.f32 %v2292_v58, %v331_v33  ;;  %v368_v42 = vadd.f32 %v2296_v4, %v332_v34 }
  0xfa   :  { %986 = vmatmul.bf16.gmra.mxu0 %v2268_v27  ;;  %1015 = vmatmul.bf16.gmra.mxu1 %v2270_v28 }
  0xfb   :  { %v447_v45 = vmax.f32 %v367_v37, 0.0  ;;  %v448_v47 = vmax.f32 %v368_v42, 0.0  ;;  %v2020_v37 = vld [vmem:[%s2522_s5 + $0x20] sm:$0xff] }
  0xfc   :  { %v250_v49 = vpop.f32.mrf.mxu3 }
  0xfd   :  { %v467_v50 = vpack.c.bf16 %v447_v45, %v443_v43  ;;  %v468_v51 = vpack.c.bf16 %v448_v47, %v444_v46  ;;  %v268_v38 = vpack.c.bf16 %v250_v49, %v2275_v41  ;;  %v2019_v45 = vld [vmem:[%s2522_s5 + $0x18] sm:$0xff] }
  0xff   :  { %933 = vmatmul.bf16.gmra.mxu2 %v467_v50  ;;  %962 = vmatmul.bf16.gmra.mxu3 %v468_v51  ;;  %v335_v52 = vunpack.c.l.bf16 %v268_v38  ;;  %v336_v53 = vunpack.c.h.bf16 %v268_v38 }
 0x101   :  { %v371_v57 = vadd.f32 %v2292_v58, %v335_v52  ;;  %v372_v59 = vadd.f32 %v2296_v4, %v336_v53 }
 0x103   :  { %v451_v41 = vmax.f32 %v371_v57, 0.0  ;;  %v452_v1 = vmax.f32 %v372_v59, 0.0  ;;  %v2017_v59 = vld [vmem:[%s2522_s5 + $0x8] sm:$0xff] }
 0x104   :  { %v252_v27 = vpop.f32.mrf.mxu3 }
 0x105   :  { %v270_v28 = vpack.c.bf16 %v252_v27, %v2280_v12  ;;  %v2031_v27 = vld [vmem:[%s2522_s5 + $0x78] sm:$0xff] }
 0x106   :  { %2044 = vmatpush.bf16.msrb.mxu1 %v2031_v27 }
 0x107   :  { %v339_v54 = vunpack.c.l.bf16 %v270_v28  ;;  %v340_v55 = vunpack.c.h.bf16 %v270_v28 }
 0x109   :  { %v375_v62 = vadd.f32 %v2292_v58, %v339_v54  ;;  %v376_v63 = vadd.f32 %v2296_v4, %v340_v55 }
 0x10a   :  { %991 = vmatmul.bf16.gmra.mxu0 %v2284_v35  ;;  %1020 = vmatmul.bf16.gmra.mxu1 %v2286_v10 }
 0x10b   :  { %v455_v0 = vmax.f32 %v375_v62, 0.0  ;;  %v456_v2 = vmax.f32 %v376_v63, 0.0  ;;  %v2030_v62 = vld [vmem:[%s2522_s5 + $0x70] sm:$0xff] }
 0x10c   :  { %2045 = vmatpush.bf16.msrb.mxu1 %v2030_v62 }
 0x10d   :  { %v471_v3 = vpack.c.bf16 %v455_v0, %v451_v41  ;;  %v472_v12 = vpack.c.bf16 %v456_v2, %v452_v1  ;;  %v1097_v0 = vld [vmem:[%s2521_s4] sm:$0x3]  ;;  %v2029_v1 = vld [vmem:[%s2522_s5 + $0x68] sm:$0xff] }
 0x10f   :  { %938 = vmatmul.bf16.gmra.mxu2 %v471_v3  ;;  %967 = vmatmul.bf16.gmra.mxu3 %v472_v12 }
 0x110   :  { %2046 = vmatpush.bf16.msrb.mxu1 %v2029_v1 }
 0x11a   :  { %996 = vmatmul.bf16.gmra.mxu0 %v2302_v22  ;;  %1025 = vmatmul.bf16.gmra.mxu1 %v2304_v25 }
 0x11f   :  { %1039 = vmatmul.bf16.vlgmr.msra.gmra.mxu2 %v2312_v40  ;;  %1068 = vmatmul.bf16.vlgmr.msra.gmra.mxu3 %v2310_v39 }
 0x127   :  { %v866_v58 = vpop.f32.mrf.mxu0  ;;  %v895_v35 = vpop.f32.mrf.mxu1 }
 0x128   :  { %v896_v4 = vadd.f32 %v895_v35, %v866_v58  ;;  %v1099_v58 = vperm.slane %v1097_v0, 0  ;;  %v1100_v35 = vperm.slane %v1097_v0, 1 }
 0x12f   :  { %v868_v10 = vpop.f32.mrf.mxu0  ;;  %v897_v5 = vpop.f32.mrf.mxu1  ;;  %1044 = vmatmul.bf16.gmra.mxu2 %v2322_v16  ;;  %1073 = vmatmul.bf16.gmra.mxu3 %v2324_v13  ;;  %v2023_v13 = vld [vmem:[%s2522_s5 + $0x38] sm:$0xff] }
 0x130   :  { %1327 = vmatpush.bf16.msrb.mxu0 %v2023_v13  ;;  %v898_v31 = vadd.f32 %v897_v5, %v868_v10  ;;  %v2016_v10 = vld [vmem:[%s2522_s5] sm:$0xff] }
 0x131   :  { %v2028_v5 = vld [vmem:[%s2522_s5 + $0x60] sm:$0xff] }
 0x132   :  { %2047 = vmatpush.bf16.msrb.mxu1 %v2028_v5 }
 0x134   :  { %1328 = vmatpush.bf16.msrb.mxu0 %v2022_v21 }
 0x137   :  { %v871_v6 = vpop.f32.mrf.mxu0  ;;  %v900_v7 = vpop.f32.mrf.mxu1 }
 0x138   :  { %v901_v8 = vadd.f32 %v900_v7, %v871_v6  ;;  %1329 = vmatpush.bf16.msrb.mxu0 %v2021_v30  ;;  %v1103_v6 = vpack.c.bf16 %v1100_v35, %v1099_v58  ;;  %v2024_v30 = vld [vmem:[%s2522_s5 + $0x40] sm:$0xff] }
 0x13c   :  { %1330 = vmatpush.bf16.msrb.mxu0 %v2020_v37 }
 0x13f   :  { %v873_v9 = vpop.f32.mrf.mxu0  ;;  %v902_v22 = vpop.f32.mrf.mxu1  ;;  %1049 = vmatmul.bf16.gmra.mxu2 %v467_v50  ;;  %1078 = vmatmul.bf16.gmra.mxu3 %v468_v51  ;;  %v2018_v50 = vld [vmem:[%s2522_s5 + $0x10] sm:$0xff] }
 0x140   :  { %v903_v25 = vadd.f32 %v902_v22, %v873_v9  ;;  %1331 = vmatpush.bf16.msrb.mxu0 %v2019_v45  ;;  %v2027_v9 = vld [vmem:[%s2522_s5 + $0x58] sm:$0xff] }
 0x141   :  { %2048 = vmatpush.bf16.msrb.mxu1 %v2027_v9 }
 0x144   :  { %1332 = vmatpush.bf16.msrb.mxu0 %v2018_v50 }
 0x147   :  { %v876_v40 = vpop.f32.mrf.mxu0  ;;  %v905_v11 = vpop.f32.mrf.mxu1 }
 0x148   :  { %v906_v39 = vadd.f32 %v905_v11, %v876_v40  ;;  %1333 = vmatpush.bf16.msrb.mxu0 %v2017_v59  ;;  %v1105_v11 = vunpack.c.l.b16 %v1103_v6 }
 0x14c   :  { %1334 = vmatpush.bf16.msrb.mxu0 %v2016_v10 }
 0x14f   :  { %v878_v14 = vpop.f32.mrf.mxu0  ;;  %v907_v23 = vpop.f32.mrf.mxu1  ;;  %1054 = vmatmul.bf16.gmra.mxu2 %v471_v3  ;;  %1083 = vmatmul.bf16.gmra.mxu3 %v472_v12 }
 0x150   :  { %v908_v24 = vadd.f32 %v907_v23, %v878_v14  ;;  %1356 = vmatpush.bf16.msra.mxu0 %v2031_v27  ;;  %v1106_v14 = vunpack.c.h.b16 %v1103_v6  ;;  %v2026_v23 = vld [vmem:[%s2522_s5 + $0x50] sm:$0xff] }
 0x151   :  { %2049 = vmatpush.bf16.msrb.mxu1 %v2026_v23 }
 0x154   :  { %1357 = vmatpush.bf16.msra.mxu0 %v2030_v62 }
 0x157   :  { %v881_v15 = vpop.f32.mrf.mxu0  ;;  %v910_v16 = vpop.f32.mrf.mxu1 }
 0x158   :  { %v911_v17 = vadd.f32 %v910_v16, %v881_v15  ;;  %1358 = vmatpush.bf16.msra.mxu0 %v2029_v1  ;;  %v1108_v16 = vpack.c.b16 %v1106_v14, %v1106_v14 }
 0x15c   :  { %1359 = vmatpush.bf16.msra.mxu0 %v2028_v5 }
 0x15f   :  { %v883_v18 = vpop.f32.mrf.mxu0  ;;  %v912_v19 = vpop.f32.mrf.mxu1 }
 0x160   :  { %v2351_v20 = vadd.f32 %v912_v19, %v883_v18  ;;  %1360 = vmatpush.bf16.msra.mxu0 %v2027_v9 }
 0x162   :  { %v924_v56 = vpop.f32.mrf.mxu2  ;;  %v953_v60 = vpop.f32.mrf.mxu3 }
 0x163   :  { %v925_v26 = vadd.f32 %v924_v56, %v896_v4 }
 0x164   :  { %1361 = vmatpush.bf16.msra.mxu0 %v2026_v23 }
 0x165   :  { %v2356_v29 = vadd.f32 %v953_v60, %v925_v26  ;;  %v1114_v26 = vpack.i.b16 %v1108_v16, %v1108_v16 }
 0x167   :  { %v982_v63 = vpop.f32.mrf.mxu0  ;;  %v1011_v41 = vpop.f32.mrf.mxu1 }
 0x168   :  { %v1012_v15 = vadd.f32 %v1011_v41, %v982_v63 }
 0x16a   :  { %v926_v32 = vpop.f32.mrf.mxu2  ;;  %v955_v33 = vpop.f32.mrf.mxu3 }
 0x16b   :  { %v927_v34 = vadd.f32 %v926_v32, %v898_v31 }
 0x16d   :  { %v2361_v36 = vadd.f32 %v955_v33, %v927_v34  ;;  %v1116_v34 = vperm.slane %v1114_v26, 0 }
 0x16f   :  { %v984_v7 = vpop.f32.mrf.mxu0  ;;  %v2421_v50 = vunpack.c.l.bf16 %v1116_v34 }
 0x172   :  { %v929_v42 = vpop.f32.mrf.mxu2  ;;  %v958_v43 = vpop.f32.mrf.mxu3 }
 0x173   :  { %v930_v61 = vadd.f32 %v929_v42, %v901_v8  ;;  %v1013_v8 = vpop.f32.mrf.mxu1 }
 0x174   :  { %v1014_v33 = vadd.f32 %v1013_v8, %v984_v7 }
 0x175   :  { %v2366_v44 = vadd.f32 %v958_v43, %v930_v61 }
 0x177   :  { %v987_v19 = vpop.f32.mrf.mxu0 }
 0x17a   :  { %v931_v46 = vpop.f32.mrf.mxu2  ;;  %v960_v47 = vpop.f32.mrf.mxu3 }
 0x17b   :  { %v932_v48 = vadd.f32 %v931_v46, %v903_v25 }
 0x17d   :  { %v2371_v49 = vadd.f32 %v960_v47, %v932_v48 }
 0x17f   :  { %v989_v46 = vpop.f32.mrf.mxu0 }
 0x182   :  { %v934_v51 = vpop.f32.mrf.mxu2  ;;  %v963_v38 = vpop.f32.mrf.mxu3 }
 0x183   :  { %v935_v52 = vadd.f32 %v934_v51, %v906_v39 }
 0x185   :  { %v2376_v53 = vadd.f32 %v963_v38, %v935_v52 }
 0x18a   :  { %v936_v28 = vpop.f32.mrf.mxu2  ;;  %v965_v54 = vpop.f32.mrf.mxu3 }
 0x18b   :  { %v937_v55 = vadd.f32 %v936_v28, %v908_v24  ;;  %v1107_v24 = vpack.c.b16 %v1105_v11, %v1105_v11 }
 0x18d   :  { %v2381_v57 = vadd.f32 %v965_v54, %v937_v55  ;;  %v1110_v56 = vpack.i.b16 %v1107_v24, %v1107_v24 }
 0x18f   :  { %v1112_v32 = vperm.slane %v1110_v56, 0 }
 0x191   :  { %v2419_v45 = vunpack.c.l.bf16 %v1112_v32 }
 0x192   :  { %v939_v2 = vpop.f32.mrf.mxu2  ;;  %v968_v3 = vpop.f32.mrf.mxu3 }
 0x193   :  { %v940_v12 = vadd.f32 %v939_v2, %v911_v17  ;;  %v2025_v17 = vld [vmem:[%s2522_s5 + $0x48] sm:$0xff] }
 0x194   :  { %2050 = vmatpush.bf16.msrb.mxu1 %v2025_v17  ;;  %1362 = vmatpush.bf16.msra.mxu0 %v2025_v17 }
 0x195   :  { %v2395_v4 = vadd.f32 %v968_v3, %v940_v12  ;;  %v992_v12 = vpop.f32.mrf.mxu0 }
 0x198   :  { %2051 = vmatpush.bf16.msrb.mxu1 %v2024_v30  ;;  %1363 = vmatpush.bf16.msra.mxu0 %v2024_v30 }
 0x19a   :  { %v941_v22 = vpop.f32.mrf.mxu2  ;;  %v970_v25 = vpop.f32.mrf.mxu3 }
 0x19b   :  { %v942_v40 = vadd.f32 %v941_v22, %v2351_v20  ;;  %v1016_v20 = vpop.f32.mrf.mxu1 }
 0x19c   :  { %v1017_v52 = vadd.f32 %v1016_v20, %v987_v19 }
 0x19d   :  { %v2407_v39 = vadd.f32 %v970_v25, %v942_v40  ;;  %v994_v24 = vpop.f32.mrf.mxu0 }
 0x1a2   :  { %v1040_v13 = vpop.f32.mrf.mxu2  ;;  %v1069_v18 = vpop.f32.mrf.mxu3 }
 0x1a3   :  { %v1041_v21 = vadd.f32 %v1040_v13, %v1012_v15  ;;  %v1018_v47 = vpop.f32.mrf.mxu1 }
 0x1a4   :  { %v1019_v6 = vadd.f32 %v1018_v47, %v989_v46 }
 0x1a5   :  { %v1070_v60 = vadd.f32 %v1069_v18, %v1041_v21 }
 0x1a7   :  { %v1089_v31 = vpack.c.bf16 %v1070_v60, %v2356_v29 }
 0x1a9   :  { %v1117_v61 = vunpack.c.l.bf16 %v1089_v31  ;;  %v1118_v48 = vunpack.c.h.bf16 %v1089_v31 }
 0x1aa   :  { %v1042_v37 = vpop.f32.mrf.mxu2  ;;  %v1071_v42 = vpop.f32.mrf.mxu3 }
 0x1ab   :  { %v1043_v43 = vadd.f32 %v1042_v37, %v1014_v33  ;;  %v1135_v29 = vadd.f32 %v2419_v45, %v1117_v61  ;;  %v1136_v27 = vadd.f32 %v2421_v50, %v1118_v48  ;;  %v1021_v58 = vpop.f32.mrf.mxu1  ;;  %v997_v61 = vpop.f32.mrf.mxu0 }
 0x1ac   :  { %v1022_v23 = vadd.f32 %v1021_v58, %v992_v12 }
 0x1ad   :  { %v1072_v51 = vadd.f32 %v1071_v42, %v1043_v43  ;;  %v1175_v0 = vmax.f32 %v1135_v29, 0.0  ;;  %v1176_v1 = vmax.f32 %v1136_v27, 0.0 }
 0x1af   :  { %v1090_v38 = vpack.c.bf16 %v1072_v51, %v2361_v36 }
 0x1b1   :  { %v1119_v28 = vunpack.c.l.bf16 %v1090_v38  ;;  %v1120_v54 = vunpack.c.h.bf16 %v1090_v38 }
 0x1b2   :  { %v1045_v55 = vpop.f32.mrf.mxu2  ;;  %v1074_v59 = vpop.f32.mrf.mxu3 }
 0x1b3   :  { %v1137_v62 = vadd.f32 %v2419_v45, %v1119_v28  ;;  %v1138_v63 = vadd.f32 %v2421_v50, %v1120_v54  ;;  %v1046_v41 = vadd.f32 %v1045_v55, %v1017_v52  ;;  %v1023_v15 = vpop.f32.mrf.mxu1 }
 0x1b4   :  { %v1024_v34 = vadd.f32 %v1023_v15, %v994_v24 }
 0x1b5   :  { %v1177_v2 = vmax.f32 %v1137_v62, 0.0  ;;  %v1178_v36 = vmax.f32 %v1138_v63, 0.0  ;;  %v1075_v3 = vadd.f32 %v1074_v59, %v1046_v41 }
 0x1b7   :  { %v2428_v35 = vpack.c.bf16 %v1178_v36, %v1176_v1  ;;  %v1191_v10 = vpack.c.bf16 %v1177_v2, %v1175_v0  ;;  %v1091_v5 = vpack.c.bf16 %v1075_v3, %v2366_v44 }
 0x1b9   :  { %1335 = vmatmul.bf16.vlgmr.msrb.gmra.mxu0 %v1191_v10  ;;  %v1122_v22 = vunpack.c.h.bf16 %v1091_v5  ;;  %v1121_v25 = vunpack.c.l.bf16 %v1091_v5 }
 0x1ba   :  { %v1047_v7 = vpop.f32.mrf.mxu2  ;;  %v1076_v8 = vpop.f32.mrf.mxu3 }
 0x1bb   :  { %v1048_v9 = vadd.f32 %v1047_v7, %v1019_v6  ;;  %v1140_v14 = vadd.f32 %v2421_v50, %v1122_v22  ;;  %v1139_v13 = vadd.f32 %v2419_v45, %v1121_v25  ;;  %v1026_v46 = vpop.f32.mrf.mxu1 }
 0x1bc   :  { %v1027_v52 = vadd.f32 %v1026_v46, %v997_v61  ;;  %v2035_v46 = vld [vmem:[%s2524_s7 + $0x18] sm:$0xff] }
 0x1bd   :  { %v1077_v40 = vadd.f32 %v1076_v8, %v1048_v9  ;;  %v1180_v56 = vmax.f32 %v1140_v14, 0.0 }
 0x1bf   :  { %v1092_v11 = vpack.c.bf16 %v1077_v40, %v2371_v49  ;;  %v1179_v49 = vmax.f32 %v1139_v13, 0.0 }
 0x1c1   :  { %v1123_v16 = vunpack.c.l.bf16 %v1092_v11  ;;  %v1124_v17 = vunpack.c.h.bf16 %v1092_v11 }
 0x1c2   :  { %v1050_v44 = vpop.f32.mrf.mxu2  ;;  %v1079_v18 = vpop.f32.mrf.mxu3 }
 0x1c3   :  { %v1142_v19 = vadd.f32 %v2421_v50, %v1124_v17  ;;  %v1051_v20 = vadd.f32 %v1050_v44, %v1022_v23  ;;  %v1141_v21 = vadd.f32 %v2419_v45, %v1123_v16  ;;  %v1028_v3 = vpop.f32.mrf.mxu1 }
 0x1c5   :  { %v1182_v60 = vmax.f32 %v1142_v19, 0.0  ;;  %v1080_v26 = vadd.f32 %v1079_v18, %v1051_v20  ;;  %v1181_v30 = vmax.f32 %v1141_v21, 0.0  ;;  %v2037_v21 = vld [vmem:[%s2524_s7 + $0x28] sm:$0xff] }
 0x1c7   :  { %v1194_v31 = vpack.c.bf16 %v1182_v60, %v1180_v56  ;;  %v1193_v32 = vpack.c.bf16 %v1181_v30, %v1179_v49  ;;  %v1093_v33 = vpack.c.bf16 %v1080_v26, %v2376_v53 }
 0x1c9   :  { %1340 = vmatmul.bf16.gmra.mxu0 %v1193_v32  ;;  %1369 = vmatmul.bf16.vlgmr.msrb.gmra.mxu1 %v1194_v31  ;;  %v1125_v47 = vunpack.c.l.bf16 %v1093_v33  ;;  %v1126_v48 = vunpack.c.h.bf16 %v1093_v33  ;;  %v2036_v31 = vld [vmem:[%s2524_s7 + $0x20] sm:$0xff] }
 0x1ca   :  { %v1052_v37 = vpop.f32.mrf.mxu2  ;;  %v1081_v42 = vpop.f32.mrf.mxu3 }
 0x1cb   :  { %v1053_v43 = vadd.f32 %v1052_v37, %v1024_v34  ;;  %v1143_v29 = vadd.f32 %v2419_v45, %v1125_v47  ;;  %v1144_v53 = vadd.f32 %v2421_v50, %v1126_v48 }
 0x1cd   :  { %v1082_v51 = vadd.f32 %v1081_v42, %v1053_v43  ;;  %v1183_v41 = vmax.f32 %v1143_v29, 0.0  ;;  %v1184_v2 = vmax.f32 %v1144_v53, 0.0 }
 0x1cf   :  { %v1094_v38 = vpack.c.bf16 %v1082_v51, %v2381_v57  ;;  %v999_v57 = vpop.f32.mrf.mxu0 }
 0x1d0   :  { %v1029_v10 = vadd.f32 %v1028_v3, %v999_v57 }
 0x1d1   :  { %v1127_v27 = vunpack.c.l.bf16 %v1094_v38  ;;  %v1128_v28 = vunpack.c.h.bf16 %v1094_v38 }
 0x1d2   :  { %v1055_v54 = vpop.f32.mrf.mxu2  ;;  %v1084_v55 = vpop.f32.mrf.mxu3 }
 0x1d3   :  { %v1056_v59 = vadd.f32 %v1055_v54, %v1027_v52  ;;  %v1145_v62 = vadd.f32 %v2419_v45, %v1127_v27  ;;  %v1146_v63 = vadd.f32 %v2421_v50, %v1128_v28  ;;  %v2034_v54 = vld [vmem:[%s2524_s7 + $0x10] sm:$0xff] }
 0x1d5   :  { %v1085_v0 = vadd.f32 %v1084_v55, %v1056_v59  ;;  %v1185_v1 = vmax.f32 %v1145_v62, 0.0  ;;  %v1186_v36 = vmax.f32 %v1146_v63, 0.0 }
 0x1d7   :  { %v1195_v12 = vpack.c.bf16 %v1185_v1, %v1183_v41  ;;  %v1196_v58 = vpack.c.bf16 %v1186_v36, %v1184_v2  ;;  %v1095_v5 = vpack.c.bf16 %v1085_v0, %v2395_v4  ;;  %v2033_v1 = vld [vmem:[%s2524_s7 + $0x8] sm:$0xff] }
 0x1d9   :  { %1345 = vmatmul.bf16.gmra.mxu0 %v1195_v12  ;;  %1374 = vmatmul.bf16.gmra.mxu1 %v1196_v58  ;;  %v1129_v9 = vunpack.c.l.bf16 %v1095_v5  ;;  %v1130_v22 = vunpack.c.h.bf16 %v1095_v5 }
 0x1da   :  { %v1057_v6 = vpop.f32.mrf.mxu2  ;;  %v1086_v8 = vpop.f32.mrf.mxu3 }
 0x1db   :  { %v1058_v7 = vadd.f32 %v1057_v6, %v1029_v10  ;;  %v1147_v23 = vadd.f32 %v2419_v45, %v1129_v9  ;;  %v1148_v24 = vadd.f32 %v2421_v50, %v1130_v22 }
 0x1dd   :  { %v1087_v25 = vadd.f32 %v1086_v8, %v1058_v7  ;;  %v1187_v16 = vmax.f32 %v1147_v23, 0.0  ;;  %v1188_v13 = vmax.f32 %v1148_v24, 0.0  ;;  %v2032_v7 = vld [vmem:[%s2524_s7] sm:$0xff] }
 0x1df   :  { %v1096_v40 = vpack.c.bf16 %v1087_v25, %v2407_v39  ;;  %v2039_v39 = vld [vmem:[%s2524_s7 + $0x38] sm:$0xff] }
 0x1e0   :  { %1512 = vmatpush.bf16.msrb.mxu2 %v2039_v39 }
 0x1e1   :  { %v1131_v11 = vunpack.c.l.bf16 %v1096_v40  ;;  %v1132_v14 = vunpack.c.h.bf16 %v1096_v40 }
 0x1e3   :  { %v1149_v15 = vadd.f32 %v2419_v45, %v1131_v11  ;;  %v1150_v4 = vadd.f32 %v2421_v50, %v1132_v14  ;;  %v2038_v45 = vld [vmem:[%s2524_s7 + $0x30] sm:$0xff] }
 0x1e4   :  { %1513 = vmatpush.bf16.msrb.mxu2 %v2038_v45 }
 0x1e5   :  { %v1189_v17 = vmax.f32 %v1149_v15, 0.0  ;;  %v1190_v44 = vmax.f32 %v1150_v4, 0.0 }
 0x1e7   :  { %v1197_v18 = vpack.c.bf16 %v1189_v17, %v1187_v16  ;;  %v1198_v19 = vpack.c.bf16 %v1190_v44, %v1188_v13 }
 0x1e8   :  { %1514 = vmatpush.bf16.msrb.mxu2 %v2037_v21 }
 0x1e9   :  { %1350 = vmatmul.bf16.gmra.mxu0 %v1197_v18  ;;  %1379 = vmatmul.bf16.gmra.mxu1 %v1198_v19 }
 0x1ec   :  { %1515 = vmatpush.bf16.msrb.mxu2 %v2036_v31 }
 0x1f0   :  { %1516 = vmatpush.bf16.msrb.mxu2 %v2035_v46 }
 0x1f4   :  { %1517 = vmatpush.bf16.msrb.mxu2 %v2034_v54 }
 0x1f8   :  { %1518 = vmatpush.bf16.msrb.mxu2 %v2033_v1 }
 0x1f9   :  { %1364 = vmatmul.bf16.vlgmr.msra.gmra.mxu0 %v2428_v35  ;;  %v1393_v35 = vld [vmem:[%s2523_s6] sm:$0x1] }
 0x1fa   :  { %v1394_v56 = vpack.c.bf16 %v1393_v35, %v1393_v35 }
 0x1fc   :  { %v1396_v30 = vpack.i.b16 %v1394_v56, %v1394_v56  ;;  %1519 = vmatpush.bf16.msrb.mxu2 %v2032_v7 }
 0x1fe   :  { %v1398_v33 = vperm.slane %v1396_v30, 0 }
 0x200   :  { %v1407_v43 = vunpack.c.l.bf16 %v1398_v33 }
 0x236   :  { %v2452_v20 = vpop.f32.mrf.mxu0 }
 0x23e   :  { %v2457_v50 = vpop.f32.mrf.mxu0 }
 0x246   :  { %v1341_v60 = vpop.f32.mrf.mxu0  ;;  %v1370_v26 = vpop.f32.mrf.mxu1 }
 0x247   :  { %v1371_v49 = vadd.f32 %v1370_v26, %v1341_v60 }
 0x249   :  { %v1387_v32 = vpack.c.bf16 %v1371_v49, %v1371_v49 }
 0x24b   :  { %v1401_v42 = vunpack.c.l.bf16 %v1387_v32 }
 0x24d   :  { %v1410_v48 = vadd.f32 %v1407_v43, %v1401_v42 }
 0x24e   :  { %v1343_v34 = vpop.f32.mrf.mxu0  ;;  %v1372_v37 = vpop.f32.mrf.mxu1 }
 0x24f   :  { %v1373_v61 = vadd.f32 %v1372_v37, %v1343_v34  ;;  %v1434_v27 = vmax.f32 %v1410_v48, 0.0 }
 0x251   :  { %v1388_v47 = vpack.c.bf16 %v1373_v61, %v1373_v61 }
 0x253   :  { %v1402_v51 = vunpack.c.l.bf16 %v1388_v47 }
 0x255   :  { %v1411_v38 = vadd.f32 %v1407_v43, %v1402_v51 }
 0x256   :  { %v1346_v29 = vpop.f32.mrf.mxu0  ;;  %v1375_v52 = vpop.f32.mrf.mxu1 }
 0x257   :  { %v1435_v28 = vmax.f32 %v1411_v38, 0.0  ;;  %v1376_v53 = vadd.f32 %v1375_v52, %v1346_v29 }
 0x259   :  { %v1441_v55 = vpack.c.bf16 %v1435_v28, %v1434_v27  ;;  %v1389_v59 = vpack.c.bf16 %v1376_v53, %v1376_v53 }
 0x25b   :  { %v1403_v41 = vunpack.c.l.bf16 %v1389_v59 }
 0x25d   :  { %v1412_v36 = vadd.f32 %v1407_v43, %v1403_v41 }
 0x25e   :  { %v1348_v62 = vpop.f32.mrf.mxu0  ;;  %v1377_v63 = vpop.f32.mrf.mxu1 }
 0x25f   :  { %v1378_v0 = vadd.f32 %v1377_v63, %v1348_v62  ;;  %v1436_v10 = vmax.f32 %v1412_v36, 0.0 }
 0x261   :  { %v1390_v2 = vpack.c.bf16 %v1378_v0, %v1378_v0 }
 0x263   :  { %v1404_v57 = vunpack.c.l.bf16 %v1390_v2 }
 0x265   :  { %v1413_v3 = vadd.f32 %v1407_v43, %v1404_v57 }
 0x266   :  { %v1351_v12 = vpop.f32.mrf.mxu0  ;;  %v1380_v58 = vpop.f32.mrf.mxu1 }
 0x267   :  { %v1437_v5 = vmax.f32 %v1413_v3, 0.0  ;;  %v1381_v6 = vadd.f32 %v1380_v58, %v1351_v12 }
 0x269   :  { %v1442_v8 = vpack.c.bf16 %v1437_v5, %v1436_v10  ;;  %v1391_v9 = vpack.c.bf16 %v1381_v6, %v1381_v6 }
 0x26b   :  { %v1405_v40 = vunpack.c.l.bf16 %v1391_v9 }
 0x26d   :  { %v1414_v23 = vadd.f32 %v1407_v43, %v1405_v40 }
 0x26e   :  { %v1353_v22 = vpop.f32.mrf.mxu0  ;;  %v1382_v25 = vpop.f32.mrf.mxu1 }
 0x26f   :  { %v1383_v11 = vadd.f32 %v1382_v25, %v1353_v22  ;;  %v1438_v16 = vmax.f32 %v1414_v23, 0.0 }
 0x271   :  { %v1392_v14 = vpack.c.bf16 %v1383_v11, %v1383_v11 }
 0x273   :  { %v1406_v24 = vunpack.c.l.bf16 %v1392_v14 }
 0x275   :  { %v1415_v15 = vadd.f32 %v1407_v43, %v1406_v24 }
 0x276   :  { %v1365_v4 = vpop.f32.mrf.mxu0 }
 0x277   :  { %v1439_v17 = vmax.f32 %v1415_v15, 0.0  ;;  %v1366_v13 = vadd.f32 %v1365_v4, %v2452_v20  ;;  %v2058_v20 = vld [vmem:[%s2525_s8] ss:$0 sm:$0xff] }
 0x279   :  { %v1443_v44 = vpack.c.bf16 %v1439_v17, %v1438_v16  ;;  %v1385_v18 = vpack.c.bf16 %v1366_v13, %v1366_v13 }
 0x27b   :  { %v1399_v39 = vunpack.c.l.bf16 %v1385_v18 }
 0x27d   :  { %v1408_v35 = vadd.f32 %v1407_v43, %v1399_v39 }
 0x27e   :  { %v1367_v19 = vpop.f32.mrf.mxu0 }
 0x27f   :  { %v1368_v45 = vadd.f32 %v1367_v19, %v2457_v50  ;;  %v1432_v26 = vmax.f32 %v1408_v35, 0.0 }
 0x281   :  { %v1386_v21 = vpack.c.bf16 %v1368_v45, %v1368_v45 }
 0x283   :  { %v1400_v56 = vunpack.c.l.bf16 %v1386_v21 }
 0x285   :  { %v1409_v60 = vadd.f32 %v1407_v43, %v1400_v56 }
 0x287   :  { %v1433_v49 = vmax.f32 %v1409_v60, 0.0 }
 0x289   :  { %v1440_v30 = vpack.c.bf16 %v1433_v49, %v1432_v26 }
 0x28b   :  { %1520 = vmatmul.bf16.vlgmr.msrb.gmra.mxu2 %v1440_v30 }
 0x29b   :  { %1525 = vmatmul.bf16.gmra.mxu2 %v1441_v55 }
 0x2ab   :  { %1530 = vmatmul.bf16.gmra.mxu2 %v1442_v8 }
 0x2bb   :  { %1535 = vmatmul.bf16.gmra.mxu2 %v1443_v44 }
 0x30e   :  { %v1521_v31 = vpop.f32.mrf.mxu2 }
 0x30f   :  { %v1522_v32 = vadd.f32 %v2058_v20, %v1521_v31 }
 0x311   :  { %2059 = vtanh.f32 %v1522_v32 }
 0x316   :  { %v1523_v50 = vpop.f32.mrf.mxu2 }
 0x317   :  { %v2060_v33 = vpop.eup %2059  ;;  %v1524_v34 = vadd.f32 %v2058_v20, %v1523_v50 }
 0x318   :  { %1550 = vst.msk [vmem:[%s2526_s9] sm:$0xff] %vm1549_vm2, %v2060_v33 }
 0x319   :  { %2061 = vtanh.f32 %v1524_v34 }
 0x31e   :  { %v1526_v37 = vpop.f32.mrf.mxu2 }
 0x31f   :  { %v2062_v42 = vpop.eup %2061  ;;  %v1527_v43 = vadd.f32 %v2058_v20, %v1526_v37 }
 0x320   :  { %1551 = vst.msk [vmem:[%s2526_s9 + $0x8] sm:$0xff] %vm1549_vm2, %v2062_v42 }
 0x321   :  { %2063 = vtanh.f32 %v1527_v43 }
 0x326   :  { %v1528_v61 = vpop.f32.mrf.mxu2 }
 0x327   :  { %v2064_v46 = vpop.eup %2063  ;;  %v1529_v47 = vadd.f32 %v2058_v20, %v1528_v61 }
 0x328   :  { %1552 = vst.msk [vmem:[%s2526_s9 + $0x10] sm:$0xff] %vm1549_vm2, %v2064_v46 }
 0x329   :  { %2065 = vtanh.f32 %v1529_v47 }
 0x32e   :  { %v1531_v48 = vpop.f32.mrf.mxu2 }
 0x32f   :  { %v2066_v51 = vpop.eup %2065  ;;  %v1532_v38 = vadd.f32 %v2058_v20, %v1531_v48 }
 0x330   :  { %1553 = vst.msk [vmem:[%s2526_s9 + $0x18] sm:$0xff] %vm1549_vm2, %v2066_v51 }
 0x331   :  { %2067 = vtanh.f32 %v1532_v38 }
 0x336   :  { %v1533_v29 = vpop.f32.mrf.mxu2 }
 0x337   :  { %v2068_v52 = vpop.eup %2067  ;;  %v1534_v27 = vadd.f32 %v2058_v20, %v1533_v29 }
 0x338   :  { %1554 = vst.msk [vmem:[%s2526_s9 + $0x20] sm:$0xff] %vm1549_vm2, %v2068_v52 }
 0x339   :  { %2069 = vtanh.f32 %v1534_v27 }
 0x33e   :  { %v1536_v28 = vpop.f32.mrf.mxu2 }
 0x33f   :  { %v2070_v53 = vpop.eup %2069  ;;  %v1537_v54 = vadd.f32 %v2058_v20, %v1536_v28 }
 0x340   :  { %1555 = vst.msk [vmem:[%s2526_s9 + $0x28] sm:$0xff] %vm1549_vm2, %v2070_v53 }
 0x341   :  { %2071 = vtanh.f32 %v1537_v54 }
 0x346   :  { %v1538_v55 = vpop.f32.mrf.mxu2 }
 0x347   :  { %v2072_v59 = vpop.eup %2071  ;;  %v1539_v62 = vadd.f32 %v2058_v20, %v1538_v55 }
 0x348   :  { %1556 = vst.msk [vmem:[%s2526_s9 + $0x30] sm:$0xff] %vm1549_vm2, %v2072_v59 }
 0x349   :  { %2073 = vtanh.f32 %v1539_v62 }
 0x34f   :  { %v2074_v63 = vpop.eup %2073 }
 0x350   :  { %1557 = vst.msk [vmem:[%s2526_s9 + $0x38] sm:$0xff] %vm1549_vm2, %v2074_v63 }
 0x351   :  { %1562 = vsyncpa [#allocation3], 1 }
 0x352   :  { %1563 = vsyncpa [#allocation5], 1 }

</bundles_post_ra>
